<compile_context>
chip_gen: v7x
topology: tpu7x:2x2x1
jax: 0.10.0
libtpu: 0.0.40
codegen_flags: <defaults>
</compile_context>

<pallas_src>
from functools import partial

import jax
import jax.numpy as jnp
import numpy as np
from jax import lax
from jax.experimental import pallas as pl
from jax.experimental.pallas import tpu as pltpu


# ----------------------------------------------------------------------------
# Helpers
# ----------------------------------------------------------------------------
def _conv_chain_hw(h, w):
    """Spatial dims after each NatureCNN conv ((k,s) = (8,4),(4,2),(3,1))."""
    dims = []
    for k, s in ((8, 4), (4, 2), (3, 1)):
        h = (h - k) // s + 1
        w = (w - k) // s + 1
        dims.append((h, w))
    return dims


def _pick_batch_tile(n, rows_per_sample, bytes_per_sample):
    """Largest divisor of n that keeps >=2 grid steps (v7x megacore), a
    moderate per-step GEMM row count, and the double-buffered blocks small."""
    if n <= 1:
        return 1
    cap = max(1, n // 2)                                     # >= 2 grid steps
    cap = min(cap, max(1, 4096 // max(rows_per_sample, 1)))  # rows per step
    cap = min(cap, max(1, (4 * 1024 * 1024) // max(bytes_per_sample, 1)))
    bt = 1
    for d in range(1, min(cap, n) + 1):
        if n % d == 0:
            bt = d
    return bt


def _nchw_to_s2d_nhwc(x, s):
    """NCHW -> NHWC + space-to-depth by s in one transpose (no duplication)."""
    n, c, h, w = x.shape
    hs, ws = h // s, w // s
    x = x[:, :, : hs * s, : ws * s]
    x = x.reshape(n, c, hs, s, ws, s).transpose(0, 2, 4, 3, 5, 1)
    return x.reshape(n, hs, ws, s * s * c)


def _s2d_nhwc(x, s):
    """Space-to-depth by s on an NHWC activation (no-op for s == 1)."""
    if s == 1:
        return x
    n, h, w, c = x.shape
    hs, ws = h // s, w // s
    x = x[:, : hs * s, : ws * s, :].reshape(n, hs, s, ws, s, c)
    x = x.transpose(0, 1, 3, 2, 4, 5)
    return x.reshape(n, hs, ws, s * s * c)


# ----------------------------------------------------------------------------
# Pallas kernel 1: stride-1 conv (kk x kk taps) + bias + ReLU, fused tap gather.
#   y_ref: (bt, hs, ws, C)      bf16   batch-tile of s2d'd NHWC input
#   w_ref: (kk*kk, C, cout)     bf16   tap-major weights, VMEM-resident
#   b_ref: (1, cout)            f32
#   o_ref: (bt, oh*ow, cout)    bf16
# ----------------------------------------------------------------------------
def _conv_taps_relu_kernel(y_ref, w_ref, b_ref, o_ref, *, kk, oh, ow):
    bt = y_ref.shape[0]
    cin = y_ref.shape[-1]
    cout = o_ref.shape[-1]
    acc = None
    for p in range(kk):
        for q in range(kk):
            tap = y_ref[:, p:p + oh, q:q + ow, :].reshape(bt * oh * ow, cin)
            d = jnp.dot(tap, w_ref[p * kk + q],
                        preferred_element_type=jnp.float32)
            acc = d if acc is None else acc + d
    out = jnp.maximum(acc + b_ref[...], 0.0)
    o_ref[...] = out.reshape(bt, oh * ow, cout).astype(o_ref.dtype)


def conv_taps_relu(y, w_taps, bias):
    """y: (N, hs, ws, C) bf16 (already space-to-depth'd),
    w_taps: (kk*kk, C, cout) bf16, bias: (1, cout) f32.
    Returns relu(conv_stride1(y, w) + b) as (N, oh, ow, cout) bf16."""
    n, hs, ws, cin = y.shape
    taps, cin2, cout = w_taps.shape
    assert cin2 == cin
    kk = int(round(taps ** 0.5))
    assert kk * kk == taps
    oh, ow = hs - kk + 1, ws - kk + 1

    bytes_per_sample = (hs * ws * cin + oh * ow * cout) * 2
    bt = _pick_batch_tile(n, oh * ow, bytes_per_sample)

    out = pl.pallas_call(
        partial(_conv_taps_relu_kernel, kk=kk, oh=oh, ow=ow),
        out_shape=jax.ShapeDtypeStruct((n, oh * ow, cout), jnp.bfloat16),
        grid=(n // bt,),
        in_specs=[
            pl.BlockSpec((bt, hs, ws, cin), lambda i: (i, 0, 0, 0)),   # pipelined
            pl.BlockSpec((taps, cin, cout), lambda i: (0, 0, 0)),      # resident
            pl.BlockSpec((1, cout), lambda i: (0, 0)),                 # resident
        ],
        out_specs=pl.BlockSpec((bt, oh * ow, cout), lambda i: (i, 0, 0)),
        compiler_params=pltpu.CompilerParams(
            dimension_semantics=("parallel",),
            vmem_limit_bytes=32 * 1024 * 1024,
        ),
    )(y, w_taps, bias)
    return out.reshape(n, oh, ow, cout)


# ----------------------------------------------------------------------------
# Pallas kernel 2: final Linear + ReLU (f32 output).
# ----------------------------------------------------------------------------
def _linear_relu_kernel(a_ref, w_ref, b_ref, o_ref):
    acc = jnp.dot(a_ref[...], w_ref[...], preferred_element_type=jnp.float32)
    o_ref[...] = jnp.maximum(acc + b_ref[...], 0.0).astype(o_ref.dtype)


def linear_relu(a, w, b):
    """a: (M, K) bf16, w: (K, N) bf16, b: (1, N) f32 -> relu(a @ w + b) f32."""
    m, k = a.shape
    k2, n = w.shape
    assert k2 == k and b.shape == (1, n)

    tn = 128 if (n % 128 == 0 and n > 128) else n
    tm = m
    if m > 512:                       # tile large batches (keeps blocks small,
        for d in range(8, 513, 8):    # >=2 row steps for v7x megacore)
            if m % d == 0:
                tm = d

    out = pl.pallas_call(
        _linear_relu_kernel,
        out_shape=jax.ShapeDtypeStruct((m, n), jnp.float32),
        grid=(m // tm, n // tn),
        in_specs=[
            pl.BlockSpec((tm, k), lambda i, j: (i, 0)),
            pl.BlockSpec((k, tn), lambda i, j: (0, j)),
            pl.BlockSpec((1, tn), lambda i, j: (0, j)),
        ],
        out_specs=pl.BlockSpec((tm, tn), lambda i, j: (i, j)),
        compiler_params=pltpu.CompilerParams(
            dimension_semantics=("parallel", "parallel"),
            vmem_limit_bytes=32 * 1024 * 1024,
        ),
    )(a, w, b)
    return out


# ----------------------------------------------------------------------------
# Parameters: PyTorch-style init + one-time kernel-layout preparation
# ----------------------------------------------------------------------------
def init_params(key, n_input_channels, n_flatten, features_dim):
    keys = jax.random.split(key, 8)

    def uniform(k, shape, fan_in):
        bound = 1.0 / np.sqrt(fan_in)
        return jax.random.uniform(k, shape, jnp.float32, -bound, bound)

    return {
        "w1": uniform(keys[0], (32, n_input_channels, 8, 8), n_input_channels * 64),
        "b1": uniform(keys[1], (32,), n_input_channels * 64),
        "w2": uniform(keys[2], (64, 32, 4, 4), 32 * 16),
        "b2": uniform(keys[3], (64,), 32 * 16),
        "w3": uniform(keys[4], (64, 64, 3, 3), 64 * 9),
        "b3": uniform(keys[5], (64,), 64 * 9),
        "wl": uniform(keys[6], (features_dim, n_flatten), n_flatten),
        "bl": uniform(keys[7], (features_dim,), n_flatten),
    }


def prepare_params(params, observation_shape):
    """One-time conversion to kernel-ready layout (hoisted out of the forward):
    stride folding + tap-major reordering of the conv weights, /255 folded into
    conv1, NCHW-flatten permutation folded into the linear weight, bf16 casts."""
    if len(observation_shape) == 2:
        c_in, h, w = 1, observation_shape[0], observation_shape[1]
    else:
        c_in, h, w = observation_shape
    (_, _), (_, _), (h3, w3) = _conv_chain_hw(h, w)

    def prep_conv(weight, bias, k, s, scale=1.0):
        cout, cin = weight.shape[0], weight.shape[1]
        kk = k // s
        wt = weight.reshape(cout, cin, kk, s, kk, s).transpose(2, 4, 3, 5, 1, 0)
        wt = wt.reshape(kk * kk, s * s * cin, cout) * jnp.float32(scale)
        return wt.astype(jnp.bfloat16), bias.reshape(1, cout).astype(jnp.float32)

    w1t, b1 = prep_conv(params["w1"], params["b1"], 8, 4, scale=1.0 / 255.0)
    w2t, b2 = prep_conv(params["w2"], params["b2"], 4, 2)
    w3t, b3 = prep_conv(params["w3"], params["b3"], 3, 1)

    wl = params["wl"]                                   # (F, n_flatten), NCHW flatten order
    feat = wl.shape[0]
    wl_nhwc = wl.reshape(feat, 64, h3, w3).transpose(0, 2, 3, 1)
    wl_nhwc = wl_nhwc.reshape(feat, h3 * w3 * 64)       # NHWC flatten order
    return {
        "w1": w1t, "b1": b1,
        "w2": w2t, "b2": b2,
        "w3": w3t, "b3": b3,
        "wl": wl_nhwc.T.astype(jnp.bfloat16),           # (n_flatten, F)
        "bl": params["bl"].reshape(1, feat).astype(jnp.float32),
    }


# ----------------------------------------------------------------------------
# Forward pass (observations in [0, 255]; /255 is folded into conv1 weights)
# ----------------------------------------------------------------------------
def nature_cnn_forward(prep, observations):
    """observations: (N, C, H, W) or (C, H, W). Returns (N, features_dim) f32."""
    x = observations
    if x.ndim == 3:
        x = x[None]
    x = x.astype(jnp.bfloat16)                     # cast first: transpose in bf16

    y = _nchw_to_s2d_nhwc(x, 4)                    # conv1: k=8, s=4 -> 2x2 taps
    a = conv_taps_relu(y, prep["w1"], prep["b1"])
    y = _s2d_nhwc(a, 2)                            # conv2: k=4, s=2 -> 2x2 taps
    a = conv_taps_relu(y, prep["w2"], prep["b2"])
    a = conv_taps_relu(a, prep["w3"], prep["b3"])  # conv3: k=3, s=1 -> 3x3 taps

    n, oh, ow, c = a.shape
    flat = a.reshape(n, oh * ow * c)               # NHWC flatten (weight prepermuted)
    return linear_relu(flat, prep["wl"], prep["bl"])


# ----------------------------------------------------------------------------
# References for correctness checks
# ----------------------------------------------------------------------------
def nature_cnn_reference_bf16(params, observations):
    """Same arithmetic as the kernels (bf16 operands, f32 accumulation)."""
    x = observations
    if x.ndim == 3:
        x = x[None]
    x = x.astype(jnp.float32)

    def conv(x, w, b, s, scale=1.0):
        y = lax.conv_general_dilated(
            x.astype(jnp.bfloat16), (w * jnp.float32(scale)).astype(jnp.bfloat16),
            window_strides=(s, s), padding="VALID",
            dimension_numbers=("NCHW", "OIHW", "NCHW"),
            preferred_element_type=jnp.float32)
        return jnp.maximum(y + b[None, :, None, None], 0.0)

    x = conv(x, params["w1"], params["b1"], 4, scale=1.0 / 255.0)
    x = conv(x, params["w2"], params["b2"], 2)
    x = conv(x, params["w3"], params["b3"], 1)
    flat = x.reshape(x.shape[0], -1)
    acc = jnp.dot(flat.astype(jnp.bfloat16), params["wl"].T.astype(jnp.bfloat16),
                  preferred_element_type=jnp.float32)
    return jnp.maximum(acc + params["bl"], 0.0)


def nature_cnn_reference_f32(params, observations):
    """Straight f32 transcription of the PyTorch module."""
    x = observations
    if x.ndim == 3:
        x = x[None]
    x = x.astype(jnp.float32) / 255.0

    def conv(x, w, b, s):
        y = lax.conv_general_dilated(
            x, w, window_strides=(s, s), padding="VALID",
            dimension_numbers=("NCHW", "OIHW", "NCHW"))
        return jnp.maximum(y + b[None, :, None, None], 0.0)

    x = conv(x, params["w1"], params["b1"], 4)
    x = conv(x, params["w2"], params["b2"], 2)
    x = conv(x, params["w3"], params["b3"], 1)
    flat = x.reshape(x.shape[0], -1)
    return jnp.maximum(flat @ params["wl"].T + params["bl"], 0.0)


if __name__ == "__main__":
    # Smallest spatial size that keeps the full conv chain valid: 36 -> 8 -> 3 -> 1.
    batch, channels, spatial = 2, 4, 36
    features_dim = 128
    obs_shape = (channels, spatial, spatial)
    h3, w3 = _conv_chain_hw(spatial, spatial)[-1]
    n_flatten = 64 * h3 * w3          # 64 * 1 * 1

    key = jax.random.PRNGKey(0)
    pkey, xkey = jax.random.split(key)
    params = init_params(pkey, channels, n_flatten, features_dim)
    prep = prepare_params(params, obs_shape)      # one-time weight preprocessing
    observations = jax.random.uniform(
        xkey, (batch, channels, spatial, spatial), jnp.float32, 0.0, 255.0)

    fwd = jax.jit(nature_cnn_forward)
    out = jax.block_until_ready(fwd(prep, observations))
    assert out.shape == (batch, features_dim), out.shape

    # Tight check vs. a reference using the same bf16-operand / f32-accum math
    # (validates stride folding, tap order, /255 fold, flatten permutation, ReLU).
    ref_bf16 = jax.block_until_ready(
        jax.jit(nature_cnn_reference_bf16)(params, observations))
    np.testing.assert_allclose(np.asarray(out), np.asarray(ref_bf16),
                               rtol=1e-2, atol=1e-2)

    # Loose sanity check vs. pure-f32 module semantics.
    ref_f32 = jax.block_until_ready(
        jax.jit(nature_cnn_reference_f32)(params, observations))
    np.testing.assert_allclose(np.asarray(out), np.asarray(ref_f32),
                               rtol=1e-1, atol=1e-1)

    print("KERNEL_OK")
</pallas_src>

<mosaic_0001>
module attributes {stable_mosaic.version = 11 : i64} {
  func.func @_conv_taps_relu_kernel(%arg0: i32, %arg1: memref<1x9x9x64xbf16, #tpu.memory_space<vmem>>, %arg2: memref<4x64x32xbf16, #tpu.memory_space<vmem>>, %arg3: memref<1x32xf32, #tpu.memory_space<vmem>>, %arg4: memref<1x64x32xbf16, #tpu.memory_space<vmem>>) attributes {dimension_semantics = [#tpu.dimension_semantics<parallel>], iteration_bounds = array<i64: 2>, scalar_prefetch = 0 : i64, scratch_operands = 0 : i64, tpu.core_type = #tpu.core_type<tc>, window_params = [{transform_indices = @transform_0, window_bounds = array<i64: 1, 9, 9, 64>}, {pipeline_mode = #tpu.pipeline_mode<synchronous>, transform_indices = @transform_1, window_bounds = array<i64: 4, 64, 32>}, {pipeline_mode = #tpu.pipeline_mode<synchronous>, transform_indices = @transform_2, window_bounds = array<i64: 1, 32>}, {transform_indices = @transform_3, window_bounds = array<i64: 1, 64, 32>}]} {
    %c0 = arith.constant 0 : index
    %c0_0 = arith.constant 0 : index
    %c0_1 = arith.constant 0 : index
    %c0_2 = arith.constant 0 : index
    %0 = vector.load %arg1[%c0, %c0_0, %c0_1, %c0_2] : memref<1x9x9x64xbf16, #tpu.memory_space<vmem>>, vector<1x8x8x64xbf16>
    %1 = vector.shape_cast %0 : vector<1x8x8x64xbf16> to vector<64x64xbf16>
    %c0_3 = arith.constant 0 : index
    %c0_4 = arith.constant 0 : index
    %c0_5 = arith.constant 0 : index
    %2 = vector.load %arg2[%c0_3, %c0_4, %c0_5] : memref<4x64x32xbf16, #tpu.memory_space<vmem>>, vector<1x64x32xbf16>
    %3 = vector.shape_cast %2 : vector<1x64x32xbf16> to vector<64x32xbf16>
    %cst = arith.constant dense<0.000000e+00> : vector<64x32xf32>
    %4 = tpu.matmul %1, %3, %cst {dimension_numbers = #tpu.dot_dimension_numbers<[1], [0], [0], [1], [0, 0, 1, 1], [], []>} : vector<64x64xbf16>, vector<64x32xbf16>, vector<64x32xf32> -> vector<64x32xf32>
    %c0_6 = arith.constant 0 : index
    %c0_7 = arith.constant 0 : index
    %c1 = arith.constant 1 : index
    %c0_8 = arith.constant 0 : index
    %5 = vector.load %arg1[%c0_6, %c0_7, %c1, %c0_8] : memref<1x9x9x64xbf16, #tpu.memory_space<vmem>>, vector<1x8x8x64xbf16>
    %6 = vector.shape_cast %5 : vector<1x8x8x64xbf16> to vector<64x64xbf16>
    %c1_9 = arith.constant 1 : index
    %c0_10 = arith.constant 0 : index
    %c0_11 = arith.constant 0 : index
    %7 = vector.load %arg2[%c1_9, %c0_10, %c0_11] : memref<4x64x32xbf16, #tpu.memory_space<vmem>>, vector<1x64x32xbf16>
    %8 = vector.shape_cast %7 : vector<1x64x32xbf16> to vector<64x32xbf16>
    %cst_12 = arith.constant dense<0.000000e+00> : vector<64x32xf32>
    %9 = tpu.matmul %6, %8, %cst_12 {dimension_numbers = #tpu.dot_dimension_numbers<[1], [0], [0], [1], [0, 0, 1, 1], [], []>} : vector<64x64xbf16>, vector<64x32xbf16>, vector<64x32xf32> -> vector<64x32xf32>
    %10 = arith.addf %4, %9 : vector<64x32xf32>
    %c0_13 = arith.constant 0 : index
    %c1_14 = arith.constant 1 : index
    %c0_15 = arith.constant 0 : index
    %c0_16 = arith.constant 0 : index
    %11 = vector.load %arg1[%c0_13, %c1_14, %c0_15, %c0_16] : memref<1x9x9x64xbf16, #tpu.memory_space<vmem>>, vector<1x8x8x64xbf16>
    %12 = vector.shape_cast %11 : vector<1x8x8x64xbf16> to vector<64x64xbf16>
    %c2 = arith.constant 2 : index
    %c0_17 = arith.constant 0 : index
    %c0_18 = arith.constant 0 : index
    %13 = vector.load %arg2[%c2, %c0_17, %c0_18] : memref<4x64x32xbf16, #tpu.memory_space<vmem>>, vector<1x64x32xbf16>
    %14 = vector.shape_cast %13 : vector<1x64x32xbf16> to vector<64x32xbf16>
    %cst_19 = arith.constant dense<0.000000e+00> : vector<64x32xf32>
    %15 = tpu.matmul %12, %14, %cst_19 {dimension_numbers = #tpu.dot_dimension_numbers<[1], [0], [0], [1], [0, 0, 1, 1], [], []>} : vector<64x64xbf16>, vector<64x32xbf16>, vector<64x32xf32> -> vector<64x32xf32>
    %16 = arith.addf %10, %15 : vector<64x32xf32>
    %c0_20 = arith.constant 0 : index
    %c1_21 = arith.constant 1 : index
    %c1_22 = arith.constant 1 : index
    %c0_23 = arith.constant 0 : index
    %17 = vector.load %arg1[%c0_20, %c1_21, %c1_22, %c0_23] : memref<1x9x9x64xbf16, #tpu.memory_space<vmem>>, vector<1x8x8x64xbf16>
    %18 = vector.shape_cast %17 : vector<1x8x8x64xbf16> to vector<64x64xbf16>
    %c3 = arith.constant 3 : index
    %c0_24 = arith.constant 0 : index
    %c0_25 = arith.constant 0 : index
    %19 = vector.load %arg2[%c3, %c0_24, %c0_25] : memref<4x64x32xbf16, #tpu.memory_space<vmem>>, vector<1x64x32xbf16>
    %20 = vector.shape_cast %19 : vector<1x64x32xbf16> to vector<64x32xbf16>
    %cst_26 = arith.constant dense<0.000000e+00> : vector<64x32xf32>
    %21 = tpu.matmul %18, %20, %cst_26 {dimension_numbers = #tpu.dot_dimension_numbers<[1], [0], [0], [1], [0, 0, 1, 1], [], []>} : vector<64x64xbf16>, vector<64x32xbf16>, vector<64x32xf32> -> vector<64x32xf32>
    %22 = arith.addf %16, %21 : vector<64x32xf32>
    %c0_27 = arith.constant 0 : index
    %c0_28 = arith.constant 0 : index
    %23 = vector.load %arg3[%c0_27, %c0_28] : memref<1x32xf32, #tpu.memory_space<vmem>>, vector<1x32xf32>
    %24 = vector.broadcast %23 : vector<1x32xf32> to vector<64x32xf32>
    %25 = arith.addf %22, %24 : vector<64x32xf32>
    %cst_29 = arith.constant 0.000000e+00 : f32
    %26 = vector.broadcast %cst_29 : f32 to vector<64x32xf32>
    %27 = arith.maximumf %25, %26 : vector<64x32xf32>
    %28 = vector.shape_cast %27 : vector<64x32xf32> to vector<1x64x32xf32>
    %29 = arith.truncf %28 : vector<1x64x32xf32> to vector<1x64x32xbf16>
    %c0_30 = arith.constant 0 : index
    %c0_31 = arith.constant 0 : index
    %c0_32 = arith.constant 0 : index
    %30 = vector.load %arg4[%c0_30, %c0_31, %c0_32] : memref<1x64x32xbf16, #tpu.memory_space<vmem>>, vector<1x64x32xbf16>
    tpu.vector_store %arg4[%c0_30, %c0_31, %c0_32], %29 {strides = array<i32>} : memref<1x64x32xbf16, #tpu.memory_space<vmem>>, vector<1x64x32xbf16>,
    return
  }
  func.func @transform_0(%arg0: i32) -> (i32, i32, i32, i32) {
    %c0_i32 = arith.constant 0 : i32
    %c0_i32_0 = arith.constant 0 : i32
    %c0_i32_1 = arith.constant 0 : i32
    %c0_i32_2 = arith.constant 0 : i32
    return %arg0, %c0_i32, %c0_i32_0, %c0_i32_1 : i32, i32, i32, i32
  }
  func.func @transform_1(%arg0: i32) -> (i32, i32, i32) {
    %c0_i32 = arith.constant 0 : i32
    %c0_i32_0 = arith.constant 0 : i32
    %c0_i32_1 = arith.constant 0 : i32
    %c0_i32_2 = arith.constant 0 : i32
    return %c0_i32, %c0_i32_0, %c0_i32_1 : i32, i32, i32
  }
  func.func @transform_2(%arg0: i32) -> (i32, i32) {
    %c0_i32 = arith.constant 0 : i32
    %c0_i32_0 = arith.constant 0 : i32
    %c0_i32_1 = arith.constant 0 : i32
    return %c0_i32, %c0_i32_0 : i32, i32
  }
  func.func @transform_3(%arg0: i32) -> (i32, i32, i32) {
    %c0_i32 = arith.constant 0 : i32
    %c0_i32_0 = arith.constant 0 : i32
    %c0_i32_1 = arith.constant 0 : i32
    return %arg0, %c0_i32, %c0_i32_0 : i32, i32, i32
  }
}

module attributes {stable_mosaic.version = 11 : i64} {
  func.func @_conv_taps_relu_kernel(%arg0: i32, %arg1: memref<1x4x4x128xbf16, #tpu.memory_space<vmem>>, %arg2: memref<4x128x64xbf16, #tpu.memory_space<vmem>>, %arg3: memref<1x64xf32, #tpu.memory_space<vmem>>, %arg4: memref<1x9x64xbf16, #tpu.memory_space<vmem>>) attributes {dimension_semantics = [#tpu.dimension_semantics<parallel>], iteration_bounds = array<i64: 2>, scalar_prefetch = 0 : i64, scratch_operands = 0 : i64, tpu.core_type = #tpu.core_type<tc>, window_params = [{transform_indices = @transform_0, window_bounds = array<i64: 1, 4, 4, 128>}, {pipeline_mode = #tpu.pipeline_mode<synchronous>, transform_indices = @transform_1, window_bounds = array<i64: 4, 128, 64>}, {pipeline_mode = #tpu.pipeline_mode<synchronous>, transform_indices = @transform_2, window_bounds = array<i64: 1, 64>}, {transform_indices = @transform_3, window_bounds = array<i64: 1, 9, 64>}]} {
    %c0 = arith.constant 0 : index
    %c0_0 = arith.constant 0 : index
    %c0_1 = arith.constant 0 : index
    %c0_2 = arith.constant 0 : index
    %0 = vector.load %arg1[%c0, %c0_0, %c0_1, %c0_2] : memref<1x4x4x128xbf16, #tpu.memory_space<vmem>>, vector<1x3x3x128xbf16>
    %1 = vector.shape_cast %0 : vector<1x3x3x128xbf16> to vector<9x128xbf16>
    %c0_3 = arith.constant 0 : index
    %c0_4 = arith.constant 0 : index
    %c0_5 = arith.constant 0 : index
    %2 = vector.load %arg2[%c0_3, %c0_4, %c0_5] : memref<4x128x64xbf16, #tpu.memory_space<vmem>>, vector<1x128x64xbf16>
    %3 = vector.shape_cast %2 : vector<1x128x64xbf16> to vector<128x64xbf16>
    %cst = arith.constant dense<0.000000e+00> : vector<9x64xf32>
    %4 = tpu.matmul %1, %3, %cst {dimension_numbers = #tpu.dot_dimension_numbers<[1], [0], [0], [1], [0, 0, 1, 1], [], []>} : vector<9x128xbf16>, vector<128x64xbf16>, vector<9x64xf32> -> vector<9x64xf32>
    %c0_6 = arith.constant 0 : index
    %c0_7 = arith.constant 0 : index
    %c1 = arith.constant 1 : index
    %c0_8 = arith.constant 0 : index
    %5 = vector.load %arg1[%c0_6, %c0_7, %c1, %c0_8] : memref<1x4x4x128xbf16, #tpu.memory_space<vmem>>, vector<1x3x3x128xbf16>
    %6 = vector.shape_cast %5 : vector<1x3x3x128xbf16> to vector<9x128xbf16>
    %c1_9 = arith.constant 1 : index
    %c0_10 = arith.constant 0 : index
    %c0_11 = arith.constant 0 : index
    %7 = vector.load %arg2[%c1_9, %c0_10, %c0_11] : memref<4x128x64xbf16, #tpu.memory_space<vmem>>, vector<1x128x64xbf16>
    %8 = vector.shape_cast %7 : vector<1x128x64xbf16> to vector<128x64xbf16>
    %cst_12 = arith.constant dense<0.000000e+00> : vector<9x64xf32>
    %9 = tpu.matmul %6, %8, %cst_12 {dimension_numbers = #tpu.dot_dimension_numbers<[1], [0], [0], [1], [0, 0, 1, 1], [], []>} : vector<9x128xbf16>, vector<128x64xbf16>, vector<9x64xf32> -> vector<9x64xf32>
    %10 = arith.addf %4, %9 : vector<9x64xf32>
    %c0_13 = arith.constant 0 : index
    %c1_14 = arith.constant 1 : index
    %c0_15 = arith.constant 0 : index
    %c0_16 = arith.constant 0 : index
    %11 = vector.load %arg1[%c0_13, %c1_14, %c0_15, %c0_16] : memref<1x4x4x128xbf16, #tpu.memory_space<vmem>>, vector<1x3x3x128xbf16>
    %12 = vector.shape_cast %11 : vector<1x3x3x128xbf16> to vector<9x128xbf16>
    %c2 = arith.constant 2 : index
    %c0_17 = arith.constant 0 : index
    %c0_18 = arith.constant 0 : index
    %13 = vector.load %arg2[%c2, %c0_17, %c0_18] : memref<4x128x64xbf16, #tpu.memory_space<vmem>>, vector<1x128x64xbf16>
    %14 = vector.shape_cast %13 : vector<1x128x64xbf16> to vector<128x64xbf16>
    %cst_19 = arith.constant dense<0.000000e+00> : vector<9x64xf32>
    %15 = tpu.matmul %12, %14, %cst_19 {dimension_numbers = #tpu.dot_dimension_numbers<[1], [0], [0], [1], [0, 0, 1, 1], [], []>} : vector<9x128xbf16>, vector<128x64xbf16>, vector<9x64xf32> -> vector<9x64xf32>
    %16 = arith.addf %10, %15 : vector<9x64xf32>
    %c0_20 = arith.constant 0 : index
    %c1_21 = arith.constant 1 : index
    %c1_22 = arith.constant 1 : index
    %c0_23 = arith.constant 0 : index
    %17 = vector.load %arg1[%c0_20, %c1_21, %c1_22, %c0_23] : memref<1x4x4x128xbf16, #tpu.memory_space<vmem>>, vector<1x3x3x128xbf16>
    %18 = vector.shape_cast %17 : vector<1x3x3x128xbf16> to vector<9x128xbf16>
    %c3 = arith.constant 3 : index
    %c0_24 = arith.constant 0 : index
    %c0_25 = arith.constant 0 : index
    %19 = vector.load %arg2[%c3, %c0_24, %c0_25] : memref<4x128x64xbf16, #tpu.memory_space<vmem>>, vector<1x128x64xbf16>
    %20 = vector.shape_cast %19 : vector<1x128x64xbf16> to vector<128x64xbf16>
    %cst_26 = arith.constant dense<0.000000e+00> : vector<9x64xf32>
    %21 = tpu.matmul %18, %20, %cst_26 {dimension_numbers = #tpu.dot_dimension_numbers<[1], [0], [0], [1], [0, 0, 1, 1], [], []>} : vector<9x128xbf16>, vector<128x64xbf16>, vector<9x64xf32> -> vector<9x64xf32>
    %22 = arith.addf %16, %21 : vector<9x64xf32>
    %c0_27 = arith.constant 0 : index
    %c0_28 = arith.constant 0 : index
    %23 = vector.load %arg3[%c0_27, %c0_28] : memref<1x64xf32, #tpu.memory_space<vmem>>, vector<1x64xf32>
    %24 = vector.broadcast %23 : vector<1x64xf32> to vector<9x64xf32>
    %25 = arith.addf %22, %24 : vector<9x64xf32>
    %cst_29 = arith.constant 0.000000e+00 : f32
    %26 = vector.broadcast %cst_29 : f32 to vector<9x64xf32>
    %27 = arith.maximumf %25, %26 : vector<9x64xf32>
    %28 = vector.shape_cast %27 : vector<9x64xf32> to vector<1x9x64xf32>
    %29 = arith.truncf %28 : vector<1x9x64xf32> to vector<1x9x64xbf16>
    %c0_30 = arith.constant 0 : index
    %c0_31 = arith.constant 0 : index
    %c0_32 = arith.constant 0 : index
    %30 = vector.load %arg4[%c0_30, %c0_31, %c0_32] : memref<1x9x64xbf16, #tpu.memory_space<vmem>>, vector<1x9x64xbf16>
    tpu.vector_store %arg4[%c0_30, %c0_31, %c0_32], %29 {strides = array<i32>} : memref<1x9x64xbf16, #tpu.memory_space<vmem>>, vector<1x9x64xbf16>,
    return
  }
  func.func @transform_0(%arg0: i32) -> (i32, i32, i32, i32) {
    %c0_i32 = arith.constant 0 : i32
    %c0_i32_0 = arith.constant 0 : i32
    %c0_i32_1 = arith.constant 0 : i32
    %c0_i32_2 = arith.constant 0 : i32
    return %arg0, %c0_i32, %c0_i32_0, %c0_i32_1 : i32, i32, i32, i32
  }
  func.func @transform_1(%arg0: i32) -> (i32, i32, i32) {
    %c0_i32 = arith.constant 0 : i32
    %c0_i32_0 = arith.constant 0 : i32
    %c0_i32_1 = arith.constant 0 : i32
    %c0_i32_2 = arith.constant 0 : i32
    return %c0_i32, %c0_i32_0, %c0_i32_1 : i32, i32, i32
  }
  func.func @transform_2(%arg0: i32) -> (i32, i32) {
    %c0_i32 = arith.constant 0 : i32
    %c0_i32_0 = arith.constant 0 : i32
    %c0_i32_1 = arith.constant 0 : i32
    return %c0_i32, %c0_i32_0 : i32, i32
  }
  func.func @transform_3(%arg0: i32) -> (i32, i32, i32) {
    %c0_i32 = arith.constant 0 : i32
    %c0_i32_0 = arith.constant 0 : i32
    %c0_i32_1 = arith.constant 0 : i32
    return %arg0, %c0_i32, %c0_i32_0 : i32, i32, i32
  }
}

module attributes {stable_mosaic.version = 11 : i64} {
  func.func @_conv_taps_relu_kernel(%arg0: i32, %arg1: memref<1x3x3x64xbf16, #tpu.memory_space<vmem>>, %arg2: memref<9x64x64xbf16, #tpu.memory_space<vmem>>, %arg3: memref<1x64xf32, #tpu.memory_space<vmem>>, %arg4: memref<1x1x64xbf16, #tpu.memory_space<vmem>>) attributes {dimension_semantics = [#tpu.dimension_semantics<parallel>], iteration_bounds = array<i64: 2>, scalar_prefetch = 0 : i64, scratch_operands = 0 : i64, tpu.core_type = #tpu.core_type<tc>, window_params = [{transform_indices = @transform_0, window_bounds = array<i64: 1, 3, 3, 64>}, {pipeline_mode = #tpu.pipeline_mode<synchronous>, transform_indices = @transform_1, window_bounds = array<i64: 9, 64, 64>}, {pipeline_mode = #tpu.pipeline_mode<synchronous>, transform_indices = @transform_2, window_bounds = array<i64: 1, 64>}, {transform_indices = @transform_3, window_bounds = array<i64: 1, 1, 64>}]} {
    %c0 = arith.constant 0 : index
    %c0_0 = arith.constant 0 : index
    %c0_1 = arith.constant 0 : index
    %c0_2 = arith.constant 0 : index
    %0 = vector.load %arg1[%c0, %c0_0, %c0_1, %c0_2] : memref<1x3x3x64xbf16, #tpu.memory_space<vmem>>, vector<1x1x1x64xbf16>
    %1 = vector.shape_cast %0 : vector<1x1x1x64xbf16> to vector<1x64xbf16>
    %c0_3 = arith.constant 0 : index
    %c0_4 = arith.constant 0 : index
    %c0_5 = arith.constant 0 : index
    %2 = vector.load %arg2[%c0_3, %c0_4, %c0_5] : memref<9x64x64xbf16, #tpu.memory_space<vmem>>, vector<1x64x64xbf16>
    %3 = vector.shape_cast %2 : vector<1x64x64xbf16> to vector<64x64xbf16>
    %cst = arith.constant dense<0.000000e+00> : vector<1x64xf32>
    %4 = tpu.matmul %1, %3, %cst {dimension_numbers = #tpu.dot_dimension_numbers<[1], [0], [0], [1], [0, 0, 1, 1], [], []>} : vector<1x64xbf16>, vector<64x64xbf16>, vector<1x64xf32> -> vector<1x64xf32>
    %c0_6 = arith.constant 0 : index
    %c0_7 = arith.constant 0 : index
    %c1 = arith.constant 1 : index
    %c0_8 = arith.constant 0 : index
    %5 = vector.load %arg1[%c0_6, %c0_7, %c1, %c0_8] : memref<1x3x3x64xbf16, #tpu.memory_space<vmem>>, vector<1x1x1x64xbf16>
    %6 = vector.shape_cast %5 : vector<1x1x1x64xbf16> to vector<1x64xbf16>
    %c1_9 = arith.constant 1 : index
    %c0_10 = arith.constant 0 : index
    %c0_11 = arith.constant 0 : index
    %7 = vector.load %arg2[%c1_9, %c0_10, %c0_11] : memref<9x64x64xbf16, #tpu.memory_space<vmem>>, vector<1x64x64xbf16>
    %8 = vector.shape_cast %7 : vector<1x64x64xbf16> to vector<64x64xbf16>
    %cst_12 = arith.constant dense<0.000000e+00> : vector<1x64xf32>
    %9 = tpu.matmul %6, %8, %cst_12 {dimension_numbers = #tpu.dot_dimension_numbers<[1], [0], [0], [1], [0, 0, 1, 1], [], []>} : vector<1x64xbf16>, vector<64x64xbf16>, vector<1x64xf32> -> vector<1x64xf32>
    %10 = arith.addf %4, %9 : vector<1x64xf32>
    %c0_13 = arith.constant 0 : index
    %c0_14 = arith.constant 0 : index
    %c2 = arith.constant 2 : index
    %c0_15 = arith.constant 0 : index
    %11 = vector.load %arg1[%c0_13, %c0_14, %c2, %c0_15] : memref<1x3x3x64xbf16, #tpu.memory_space<vmem>>, vector<1x1x1x64xbf16>
    %12 = vector.shape_cast %11 : vector<1x1x1x64xbf16> to vector<1x64xbf16>
    %c2_16 = arith.constant 2 : index
    %c0_17 = arith.constant 0 : index
    %c0_18 = arith.constant 0 : index
    %13 = vector.load %arg2[%c2_16, %c0_17, %c0_18] : memref<9x64x64xbf16, #tpu.memory_space<vmem>>, vector<1x64x64xbf16>
    %14 = vector.shape_cast %13 : vector<1x64x64xbf16> to vector<64x64xbf16>
    %cst_19 = arith.constant dense<0.000000e+00> : vector<1x64xf32>
    %15 = tpu.matmul %12, %14, %cst_19 {dimension_numbers = #tpu.dot_dimension_numbers<[1], [0], [0], [1], [0, 0, 1, 1], [], []>} : vector<1x64xbf16>, vector<64x64xbf16>, vector<1x64xf32> -> vector<1x64xf32>
    %16 = arith.addf %10, %15 : vector<1x64xf32>
    %c0_20 = arith.constant 0 : index
    %c1_21 = arith.constant 1 : index
    %c0_22 = arith.constant 0 : index
    %c0_23 = arith.constant 0 : index
    %17 = vector.load %arg1[%c0_20, %c1_21, %c0_22, %c0_23] : memref<1x3x3x64xbf16, #tpu.memory_space<vmem>>, vector<1x1x1x64xbf16>
    %18 = vector.shape_cast %17 : vector<1x1x1x64xbf16> to vector<1x64xbf16>
    %c3 = arith.constant 3 : index
    %c0_24 = arith.constant 0 : index
    %c0_25 = arith.constant 0 : index
    %19 = vector.load %arg2[%c3, %c0_24, %c0_25] : memref<9x64x64xbf16, #tpu.memory_space<vmem>>, vector<1x64x64xbf16>
    %20 = vector.shape_cast %19 : vector<1x64x64xbf16> to vector<64x64xbf16>
    %cst_26 = arith.constant dense<0.000000e+00> : vector<1x64xf32>
    %21 = tpu.matmul %18, %20, %cst_26 {dimension_numbers = #tpu.dot_dimension_numbers<[1], [0], [0], [1], [0, 0, 1, 1], [], []>} : vector<1x64xbf16>, vector<64x64xbf16>, vector<1x64xf32> -> vector<1x64xf32>
    %22 = arith.addf %16, %21 : vector<1x64xf32>
    %c0_27 = arith.constant 0 : index
    %c1_28 = arith.constant 1 : index
    %c1_29 = arith.constant 1 : index
    %c0_30 = arith.constant 0 : index
    %23 = vector.load %arg1[%c0_27, %c1_28, %c1_29, %c0_30] : memref<1x3x3x64xbf16, #tpu.memory_space<vmem>>, vector<1x1x1x64xbf16>
    %24 = vector.shape_cast %23 : vector<1x1x1x64xbf16> to vector<1x64xbf16>
    %c4 = arith.constant 4 : index
    %c0_31 = arith.constant 0 : index
    %c0_32 = arith.constant 0 : index
    %25 = vector.load %arg2[%c4, %c0_31, %c0_32] : memref<9x64x64xbf16, #tpu.memory_space<vmem>>, vector<1x64x64xbf16>
    %26 = vector.shape_cast %25 : vector<1x64x64xbf16> to vector<64x64xbf16>
    %cst_33 = arith.constant dense<0.000000e+00> : vector<1x64xf32>
    %27 = tpu.matmul %24, %26, %cst_33 {dimension_numbers = #tpu.dot_dimension_numbers<[1], [0], [0], [1], [0, 0, 1, 1], [], []>} : vector<1x64xbf16>, vector<64x64xbf16>, vector<1x64xf32> -> vector<1x64xf32>
    %28 = arith.addf %22, %27 : vector<1x64xf32>
    %c0_34 = arith.constant 0 : index
    %c1_35 = arith.constant 1 : index
    %c2_36 = arith.constant 2 : index
    %c0_37 = arith.constant 0 : index
    %29 = vector.load %arg1[%c0_34, %c1_35, %c2_36, %c0_37] : memref<1x3x3x64xbf16, #tpu.memory_space<vmem>>, vector<1x1x1x64xbf16>
    %30 = vector.shape_cast %29 : vector<1x1x1x64xbf16> to vector<1x64xbf16>
    %c5 = arith.constant 5 : index
    %c0_38 = arith.constant 0 : index
    %c0_39 = arith.constant 0 : index
    %31 = vector.load %arg2[%c5, %c0_38, %c0_39] : memref<9x64x64xbf16, #tpu.memory_space<vmem>>, vector<1x64x64xbf16>
    %32 = vector.shape_cast %31 : vector<1x64x64xbf16> to vector<64x64xbf16>
    %cst_40 = arith.constant dense<0.000000e+00> : vector<1x64xf32>
    %33 = tpu.matmul %30, %32, %cst_40 {dimension_numbers = #tpu.dot_dimension_numbers<[1], [0], [0], [1], [0, 0, 1, 1], [], []>} : vector<1x64xbf16>, vector<64x64xbf16>, vector<1x64xf32> -> vector<1x64xf32>
    %34 = arith.addf %28, %33 : vector<1x64xf32>
    %c0_41 = arith.constant 0 : index
    %c2_42 = arith.constant 2 : index
    %c0_43 = arith.constant 0 : index
    %c0_44 = arith.constant 0 : index
    %35 = vector.load %arg1[%c0_41, %c2_42, %c0_43, %c0_44] : memref<1x3x3x64xbf16, #tpu.memory_space<vmem>>, vector<1x1x1x64xbf16>
    %36 = vector.shape_cast %35 : vector<1x1x1x64xbf16> to vector<1x64xbf16>
    %c6 = arith.constant 6 : index
    %c0_45 = arith.constant 0 : index
    %c0_46 = arith.constant 0 : index
    %37 = vector.load %arg2[%c6, %c0_45, %c0_46] : memref<9x64x64xbf16, #tpu.memory_space<vmem>>, vector<1x64x64xbf16>
    %38 = vector.shape_cast %37 : vector<1x64x64xbf16> to vector<64x64xbf16>
    %cst_47 = arith.constant dense<0.000000e+00> : vector<1x64xf32>
    %39 = tpu.matmul %36, %38, %cst_47 {dimension_numbers = #tpu.dot_dimension_numbers<[1], [0], [0], [1], [0, 0, 1, 1], [], []>} : vector<1x64xbf16>, vector<64x64xbf16>, vector<1x64xf32> -> vector<1x64xf32>
    %40 = arith.addf %34, %39 : vector<1x64xf32>
    %c0_48 = arith.constant 0 : index
    %c2_49 = arith.constant 2 : index
    %c1_50 = arith.constant 1 : index
    %c0_51 = arith.constant 0 : index
    %41 = vector.load %arg1[%c0_48, %c2_49, %c1_50, %c0_51] : memref<1x3x3x64xbf16, #tpu.memory_space<vmem>>, vector<1x1x1x64xbf16>
    %42 = vector.shape_cast %41 : vector<1x1x1x64xbf16> to vector<1x64xbf16>
    %c7 = arith.constant 7 : index
    %c0_52 = arith.constant 0 : index
    %c0_53 = arith.constant 0 : index
    %43 = vector.load %arg2[%c7, %c0_52, %c0_53] : memref<9x64x64xbf16, #tpu.memory_space<vmem>>, vector<1x64x64xbf16>
    %44 = vector.shape_cast %43 : vector<1x64x64xbf16> to vector<64x64xbf16>
    %cst_54 = arith.constant dense<0.000000e+00> : vector<1x64xf32>
    %45 = tpu.matmul %42, %44, %cst_54 {dimension_numbers = #tpu.dot_dimension_numbers<[1], [0], [0], [1], [0, 0, 1, 1], [], []>} : vector<1x64xbf16>, vector<64x64xbf16>, vector<1x64xf32> -> vector<1x64xf32>
    %46 = arith.addf %40, %45 : vector<1x64xf32>
    %c0_55 = arith.constant 0 : index
    %c2_56 = arith.constant 2 : index
    %c2_57 = arith.constant 2 : index
    %c0_58 = arith.constant 0 : index
    %47 = vector.load %arg1[%c0_55, %c2_56, %c2_57, %c0_58] : memref<1x3x3x64xbf16, #tpu.memory_space<vmem>>, vector<1x1x1x64xbf16>
    %48 = vector.shape_cast %47 : vector<1x1x1x64xbf16> to vector<1x64xbf16>
    %c8 = arith.constant 8 : index
    %c0_59 = arith.constant 0 : index
    %c0_60 = arith.constant 0 : index
    %49 = vector.load %arg2[%c8, %c0_59, %c0_60] : memref<9x64x64xbf16, #tpu.memory_space<vmem>>, vector<1x64x64xbf16>
    %50 = vector.shape_cast %49 : vector<1x64x64xbf16> to vector<64x64xbf16>
    %cst_61 = arith.constant dense<0.000000e+00> : vector<1x64xf32>
    %51 = tpu.matmul %48, %50, %cst_61 {dimension_numbers = #tpu.dot_dimension_numbers<[1], [0], [0], [1], [0, 0, 1, 1], [], []>} : vector<1x64xbf16>, vector<64x64xbf16>, vector<1x64xf32> -> vector<1x64xf32>
    %52 = arith.addf %46, %51 : vector<1x64xf32>
    %c0_62 = arith.constant 0 : index
    %c0_63 = arith.constant 0 : index
    %53 = vector.load %arg3[%c0_62, %c0_63] : memref<1x64xf32, #tpu.memory_space<vmem>>, vector<1x64xf32>
    %54 = arith.addf %52, %53 : vector<1x64xf32>
    %cst_64 = arith.constant 0.000000e+00 : f32
    %55 = vector.broadcast %cst_64 : f32 to vector<1x64xf32>
    %56 = arith.maximumf %54, %55 : vector<1x64xf32>
    %57 = vector.shape_cast %56 : vector<1x64xf32> to vector<1x1x64xf32>
    %58 = arith.truncf %57 : vector<1x1x64xf32> to vector<1x1x64xbf16>
    %c0_65 = arith.constant 0 : index
    %c0_66 = arith.constant 0 : index
    %c0_67 = arith.constant 0 : index
    %59 = vector.load %arg4[%c0_65, %c0_66, %c0_67] : memref<1x1x64xbf16, #tpu.memory_space<vmem>>, vector<1x1x64xbf16>
    tpu.vector_store %arg4[%c0_65, %c0_66, %c0_67], %58 {strides = array<i32>} : memref<1x1x64xbf16, #tpu.memory_space<vmem>>, vector<1x1x64xbf16>,
    return
  }
  func.func @transform_0(%arg0: i32) -> (i32, i32, i32, i32) {
    %c0_i32 = arith.constant 0 : i32
    %c0_i32_0 = arith.constant 0 : i32
    %c0_i32_1 = arith.constant 0 : i32
    %c0_i32_2 = arith.constant 0 : i32
    return %arg0, %c0_i32, %c0_i32_0, %c0_i32_1 : i32, i32, i32, i32
  }
  func.func @transform_1(%arg0: i32) -> (i32, i32, i32) {
    %c0_i32 = arith.constant 0 : i32
    %c0_i32_0 = arith.constant 0 : i32
    %c0_i32_1 = arith.constant 0 : i32
    %c0_i32_2 = arith.constant 0 : i32
    return %c0_i32, %c0_i32_0, %c0_i32_1 : i32, i32, i32
  }
  func.func @transform_2(%arg0: i32) -> (i32, i32) {
    %c0_i32 = arith.constant 0 : i32
    %c0_i32_0 = arith.constant 0 : i32
    %c0_i32_1 = arith.constant 0 : i32
    return %c0_i32, %c0_i32_0 : i32, i32
  }
  func.func @transform_3(%arg0: i32) -> (i32, i32, i32) {
    %c0_i32 = arith.constant 0 : i32
    %c0_i32_0 = arith.constant 0 : i32
    %c0_i32_1 = arith.constant 0 : i32
    return %arg0, %c0_i32, %c0_i32_0 : i32, i32, i32
  }
}

module attributes {stable_mosaic.version = 11 : i64} {
  func.func @_linear_relu_kernel(%arg0: i32, %arg1: i32, %arg2: memref<2x64xbf16, #tpu.memory_space<vmem>>, %arg3: memref<64x128xbf16, #tpu.memory_space<vmem>>, %arg4: memref<1x128xf32, #tpu.memory_space<vmem>>, %arg5: memref<2x128xf32, #tpu.memory_space<vmem>>) attributes {dimension_semantics = [#tpu.dimension_semantics<parallel>, #tpu.dimension_semantics<parallel>], iteration_bounds = array<i64: 1, 1>, scalar_prefetch = 0 : i64, scratch_operands = 0 : i64, tpu.core_type = #tpu.core_type<tc>, window_params = [{transform_indices = @transform_0, window_bounds = array<i64: 2, 64>}, {transform_indices = @transform_1, window_bounds = array<i64: 64, 128>}, {transform_indices = @transform_2, window_bounds = array<i64: 1, 128>}, {transform_indices = @transform_3, window_bounds = array<i64: 2, 128>}]} {
    %c0 = arith.constant 0 : index
    %c0_0 = arith.constant 0 : index
    %0 = vector.load %arg2[%c0, %c0_0] : memref<2x64xbf16, #tpu.memory_space<vmem>>, vector<2x64xbf16>
    %c0_1 = arith.constant 0 : index
    %c0_2 = arith.constant 0 : index
    %1 = vector.load %arg3[%c0_1, %c0_2] : memref<64x128xbf16, #tpu.memory_space<vmem>>, vector<64x128xbf16>
    %cst = arith.constant dense<0.000000e+00> : vector<2x128xf32>
    %2 = tpu.matmul %0, %1, %cst {dimension_numbers = #tpu.dot_dimension_numbers<[1], [0], [0], [1], [0, 0, 1, 1], [], []>} : vector<2x64xbf16>, vector<64x128xbf16>, vector<2x128xf32> -> vector<2x128xf32>
    %c0_3 = arith.constant 0 : index
    %c0_4 = arith.constant 0 : index
    %3 = vector.load %arg4[%c0_3, %c0_4] : memref<1x128xf32, #tpu.memory_space<vmem>>, vector<1x128xf32>
    %4 = vector.broadcast %3 : vector<1x128xf32> to vector<2x128xf32>
    %5 = arith.addf %2, %4 : vector<2x128xf32>
    %cst_5 = arith.constant 0.000000e+00 : f32
    %6 = vector.broadcast %cst_5 : f32 to vector<2x128xf32>
    %7 = arith.maximumf %5, %6 : vector<2x128xf32>
    %c0_6 = arith.constant 0 : index
    %c0_7 = arith.constant 0 : index
    %8 = vector.load %arg5[%c0_6, %c0_7] : memref<2x128xf32, #tpu.memory_space<vmem>>, vector<2x128xf32>
    tpu.vector_store %arg5[%c0_6, %c0_7], %7 {strides = array<i32>} : memref<2x128xf32, #tpu.memory_space<vmem>>, vector<2x128xf32>,
    return
  }
  func.func @transform_0(%arg0: i32, %arg1: i32) -> (i32, i32) {
    %c0_i32 = arith.constant 0 : i32
    %c0_i32_0 = arith.constant 0 : i32
    return %arg0, %c0_i32 : i32, i32
  }
  func.func @transform_1(%arg0: i32, %arg1: i32) -> (i32, i32) {
    %c0_i32 = arith.constant 0 : i32
    %c0_i32_0 = arith.constant 0 : i32
    return %c0_i32, %arg1 : i32, i32
  }
  func.func @transform_2(%arg0: i32, %arg1: i32) -> (i32, i32) {
    %c0_i32 = arith.constant 0 : i32
    %c0_i32_0 = arith.constant 0 : i32
    return %c0_i32, %arg1 : i32, i32
  }
  func.func @transform_3(%arg0: i32, %arg1: i32) -> (i32, i32) {
    %c0_i32 = arith.constant 0 : i32
    return %arg0, %arg1 : i32, i32
  }
}

</mosaic_0001>

<bundles_post_ra>
// kernel: nature_cnn_forward.4
= control target key start
LH: loop header
LB: loop body
LE: loop exit
PB: predicated region body
PF: predicated region fallthrough
CT: control target
= control target key end

     0   :  { %s1384_s12 = smov 0   ;;  %s1616_s0 = inlined_call_operand.vmem [shape: bf16[2,9,9,64], index: 0, kind: input, shape index: {}]   ;;  %s1617_s1 = inlined_call_operand.vmem [shape: bf16[4,64,32], index: 1, kind: input, shape index: {}]   ;;  %s1618_s2 = inlined_call_operand.vmem [shape: f32[1,32], index: 2, kind: input, shape index: {}]   ;;  %s1619_s3 = inlined_call_operand.vmem [shape: bf16[2,64,32], index: 3, kind: output, shape index: {}]  }
   0x1 LB: > { %s1079_s13 = sadd.s32 4294967295, %s1362_s12   ;;  %p1083_p0 = scmp.ge.s32.totalorder %s1362_s12, 1  ;;  %s1362_s12 = sphi %s1384_s12, %s13_s12  }
   0x2   : > { %p137_p1 = scmp.lt.s32.totalorder %s1362_s12, 3 }
   0x4   : > { %p138_p2 = pnand %p1083_p0, %p137_p1 }
   0x5   : > { %v1332_v0 = vld [vmem:[%s1617_s1 + $0x20] sm:$0xff] (!%p138_p2)   ;;  %p161_p3 = scmp.lt.s32.totalorder (!%p138_p2), %s1079_s13, 1  ;;  %v1334_v2 = vld [vmem:[%s1617_s1 + $0x28] sm:$0xff] (!%p138_p2)   ;;  %v1336_v4 = vld [vmem:[%s1617_s1 + $0x30] sm:$0xff] (!%p138_p2)   ;;  %vm356_vm0 = vcmask (!%p138_p2), 523264   ;;  %vm1015_vm4 = vcmask (!%p138_p2), 257024  }
   0x6   : > { %141 = sbr.rel (%p138_p2) target bundleno = 288 (0x120), region = 32  ;;  %v1333_v1 = vld [vmem:[%s1617_s1 + $0x40] sm:$0xff] (!%p138_p2)   ;;  %1235 = vmatprep.subr.bf16.mxu1 (!%p138_p2), %v1332_v0  ;;  %v1335_v3 = vld [vmem:[%s1617_s1 + $0x48] sm:$0xff] (!%p138_p2)   ;;  %v1337_v5 = vld [vmem:[%s1617_s1 + $0x50] sm:$0xff] (!%p138_p2)   ;;  %vm196_vm1 = vsmask.f32 (!%p138_p2), 3328 }
   0x7   : > { %1267 = vmatprep.subr.bf16.mxu0 (!%p138_p2), %v1333_v1  ;;  %1236 = vmatpush3.bf16.msra.mxu1 (!%p138_p2), %v1332_v0  ;;  %v1338_v6 = vld [vmem:[%s1617_s1 + $0x38] sm:$0xff] (!%p138_p2)   ;;  %vm197_vm2 = vsmask.f32 (!%p138_p2), 7440  ;;  %v1441_v19 = vld [vmem:[%s1617_s1] sm:$0xff] (!%p138_p2)   ;;  %v1345_v51 = vld [vmem:[%s1617_s1 + $0x68] sm:$0xff] (!%p138_p2)  }
   0x8   : > { %1268 = vmatpush3.bf16.msra.mxu0 (!%p138_p2), %v1333_v1  ;;  %1237 = vmatprep.subr.bf16.mxu1 (!%p138_p2), %v1334_v2  ;;  %v1339_v7 = vld [vmem:[%s1617_s1 + $0x58] sm:$0xff] (!%p138_p2)   ;;  %v1343_v20 = vld [vmem:[%s1617_s1 + $0x60] sm:$0xff] (!%p138_p2)   ;;  %vm1448_vm3 = vmor (!%p138_p2), %vm196_vm1, %vm197_vm2 }
   0x9   : > { %1269 = vmatprep.subr.bf16.mxu0 (!%p138_p2), %v1335_v3 }
   0xb   : > { %1238 = vmatpush3.bf16.msra.mxu1 (!%p138_p2), %v1334_v2 }
   0xc   : > { %1270 = vmatpush3.bf16.msra.mxu0 (!%p138_p2), %v1335_v3  ;;  %1239 = vmatprep.subr.bf16.mxu1 (!%p138_p2), %v1336_v4 }
   0xd   : > { %s1623_s13 = smov (!%p161_p3, %s1079_s13), 1  ;;  %1271 = vmatprep.subr.bf16.mxu0 %v1337_v5 }
   0xe   : > { %s1323_s24 = smul.u32 72, %s1623_s13  ;;  %s1194_s27 = sshll.u32 %s1623_s13, 5 }
   0xf   : > { %1240 = vmatpush3.bf16.msra.mxu1 %v1336_v4  ;;  %s1595_s30 = scalar_lea.vmem %s1619_s3, %s1194_s27 }
  0x10   : > { %s1419_s4 = scalar_lea.vmem %s1616_s0, %s1323_s24  ;;  %1272 = vmatpush3.bf16.msra.mxu0 %v1337_v5  ;;  %1241 = vmatprep.subr.bf16.mxu1 %v1338_v6  ;;  %v1344_v5 = vld [vmem:[%s1617_s1 + $0x8] sm:$0xff]  }
  0x11   : > { %v1340_v8 = vld [vmem:[%s1419_s4 + $0x8] ss:$8 sps:$4 sm:$0xff]   ;;  %v1426_v9 = vld [vmem:[%s1419_s4] sm:$0xf]  ;;  %v188_v11 = vld [vmem:[%s1419_s4 + $0x4] sm:$0x1]  ;;  %1273 = vmatprep.subr.bf16.mxu0 %v1339_v7 }
  0x12   : > { %v1429_v10 = vld [vmem:[%s1419_s4 + $0x8] sm:$0xf]  ;;  %1275 = vmatprep.mubr.msk.bf16.mxu0 %vm356_vm0, %v1340_v8  ;;  %v189_v12 = vld [vmem:[%s1419_s4 + $0xc] sm:$0x1]  ;;  %v200_v13 = vshrl.u32 %v1426_v9, 16  ;;  %v203_v14 = vshll.u32 %v1426_v9, 16 }
  0x13   : > { %v209_v15 = vshll.u32 %v188_v11, 16  ;;  %v214_v16 = vshrl.u32 %v1429_v10, 16  ;;  %v217_v17 = vshll.u32 %v1429_v10, 16  ;;  %v223_v18 = vshll.u32 %v189_v12, 16  ;;  %v1342_v28 = vld [vmem:[%s1419_s4 + $0x18] ss:$8 sps:$4 sm:$0xff]   ;;  %1242 = vmatpush3.bf16.msra.mxu1 %v1338_v6 }
  0x14   : > { %v202_v21 = vrot.slane %v200_v13, 4  ;;  %v205_v22 = vrot.slane %v203_v14, 5  ;;  %v1454_v30 = vld [vmem:[%s1419_s4 + $0x10] sm:$0xf]  ;;  %1274 = vmatpush3.bf16.msra.mxu0 %v1339_v7  ;;  %1251 = vmatprep.subr.bf16.mxu1 %v1441_v19  ;;  %v1458_v32 = vld [vmem:[%s1419_s4 + $0x18] sm:$0xf] }
  0x15   : > { %v211_v23 = vrot.slane %v209_v15, 5  ;;  %v216_v24 = vrot.slane %v214_v16, 4  ;;  %v219_v26 = vrot.slane %v217_v17, 5  ;;  %v225_v27 = vrot.slane %v223_v18, 5  ;;  %v190_v33 = vld [vmem:[%s1419_s4 + $0x14] sm:$0x1]  ;;  %1283 = vmatprep.subr.bf16.mxu0 %v1343_v20 }
  0x16   : > { %v206_v29 = vor.u32 %v205_v22, %v202_v21  ;;  %v191_v34 = vld [vmem:[%s1419_s4 + $0x1c] sm:$0x1]  ;;  %v228_v36 = vshrl.u32 %v1454_v30, 16  ;;  %v231_v37 = vshll.u32 %v1454_v30, 16  ;;  %v237_v38 = vshll.u32 %v190_v33, 16  ;;  %v1349_v15 = vld [vmem:[%s1617_s1 + $0x70] sm:$0xff]  }
  0x17   : > { %v220_v31 = vor.u32 %v219_v26, %v216_v24  ;;  %v242_v40 = vshrl.u32 %v1458_v32, 16  ;;  %v245_v41 = vshll.u32 %v1458_v32, 16  ;;  %v251_v42 = vshll.u32 %v191_v34, 16  ;;  %1276 = vmatmul.mubr.msk.bf16.vlgmr.msra.gmra.mrb[0].mxu0 %vm356_vm0, %v1342_v28  ;;  %v1346_v54 = vld [vmem:[%s1419_s4 + $0x28] ss:$8 sps:$4 sm:$0xff]  }
  0x18   : > { %v207_v35 = vrot.slane %v206_v29, 4  ;;  %v230_v44 = vrot.slane %v228_v36, 4  ;;  %v233_v45 = vrot.slane %v231_v37, 5  ;;  %v239_v46 = vrot.slane %v237_v38, 5  ;;  %1284 = vmatpush3.bf16.msra.mxu0 %v1343_v20  ;;  %v1476_v56 = vld [vmem:[%s1419_s4 + $0x20] sm:$0xf]  ;;  %1279 = vmatprep.mubr.msk.bf16.mxu0 %vm356_vm0, %v1346_v54 }
  0x19   : > { %v221_v39 = vrot.slane %v220_v31, 4  ;;  %v244_v48 = vrot.slane %v242_v40, 4  ;;  %v247_v49 = vrot.slane %v245_v41, 5  ;;  %v253_v50 = vrot.slane %v251_v42, 5  ;;  %1285 = vmatprep.subr.bf16.mxu0 %v1345_v51  ;;  %v1479_v57 = vld [vmem:[%s1419_s4 + $0x28] sm:$0xf] }
  0x1a   : > { %v212_v43 = vsel %vm1448_vm3, %v207_v35, %v211_v23  ;;  %v234_v53 = vor.u32 %v233_v45, %v230_v44  ;;  %v192_v58 = vld [vmem:[%s1419_s4 + $0x24] sm:$0x1]  ;;  %v193_v60 = vld [vmem:[%s1419_s4 + $0x2c] sm:$0x1]  ;;  %v256_v61 = vshrl.u32 %v1476_v56, 16  ;;  %v259_v62 = vshll.u32 %v1476_v56, 16 }
  0x1b   : > { %v226_v47 = vsel %vm1448_vm3, %v221_v39, %v225_v27  ;;  %v248_v55 = vor.u32 %v247_v49, %v244_v48  ;;  %v265_v63 = vshll.u32 %v192_v58, 16  ;;  %v270_v1 = vshrl.u32 %v1479_v57, 16  ;;  %v1348_v18 = vld [vmem:[%s1419_s4 + $0x38] ss:$8 sps:$4 sm:$0xff]   ;;  %v1501_v21 = vld [vmem:[%s1419_s4 + $0x30] sm:$0xf] }
  0x1c   : > { %v1095_v52 = vcombine.low %v212_v43, %v226_v47  ;;  %v235_v59 = vrot.slane %v234_v53, 4  ;;  %1286 = vmatpush3.bf16.msra.mxu0 %v1345_v51  ;;  %v273_v2 = vshll.u32 %v1479_v57, 16  ;;  %v279_v3 = vshll.u32 %v193_v60, 16  ;;  %v1504_v22 = vld [vmem:[%s1419_s4 + $0x38] sm:$0xf]  ;;  %v1347_v35 = vld [vmem:[%s1617_s1 + $0x10] sm:$0xff]  }
  0x1d   : > { %v249_v0 = vrot.slane %v248_v55, 4  ;;  %v258_v6 = vrot.slane %v256_v61, 4  ;;  %v261_v7 = vrot.slane %v259_v62, 5  ;;  %v267_v8 = vrot.slane %v265_v63, 5  ;;  %1287 = vmatprep.subr.bf16.mxu0 %v1349_v15  ;;  %v194_v24 = vld [vmem:[%s1419_s4 + $0x34] sm:$0x1] }
  0x1e   : > { %1243 = vmatprep.mubr.msk.bf16.mxu1 %vm356_vm0, %v1095_v52  ;;  %v240_v4 = vsel %vm1448_vm3, %v235_v59, %v239_v46  ;;  %v272_v12 = vrot.slane %v270_v1, 4  ;;  %v275_v13 = vrot.slane %v273_v2, 5  ;;  %v281_v14 = vrot.slane %v279_v3, 5  ;;  %v195_v26 = vld [vmem:[%s1419_s4 + $0x3c] sm:$0x1] }
  0x1f   : > { %v254_v11 = vsel %vm1448_vm3, %v249_v0, %v253_v50  ;;  %v262_v17 = vor.u32 %v261_v7, %v258_v6  ;;  %1280 = vmatmul.mubr.msk.bf16.gmra.mrb[4].mxu0 %vm356_vm0, %v1348_v18  ;;  %v284_v27 = vshrl.u32 %v1501_v21, 16  ;;  %v287_v29 = vshll.u32 %v1501_v21, 16  ;;  %v1351_v42 = vld [vmem:[%s1617_s1 + $0x78] sm:$0xff]   ;;  %v1147_v46 = vld [vmem:[%s1419_s4 + $0x8] sm:$0xf] }
  0x20   : > { %v1096_v16 = vcombine.low %v240_v4, %v254_v11  ;;  %v276_v20 = vor.u32 %v275_v13, %v272_v12  ;;  %v293_v31 = vshll.u32 %v194_v24, 16  ;;  %v298_v33 = vshrl.u32 %v1504_v22, 16  ;;  %1288 = vmatpush3.bf16.msra.mxu0 %v1349_v15  ;;  %v1148_v49 = vld [vmem:[%s1419_s4 + $0xc] sm:$0x1]  ;;  %v1149_v50 = vld [vmem:[%s1419_s4 + $0x10] sm:$0xf] }
  0x21   : > { %v263_v23 = vrot.slane %v262_v17, 4  ;;  %v286_v36 = vrot.slane %v284_v27, 4  ;;  %v307_v37 = vshll.u32 %v195_v26, 16  ;;  %v289_v39 = vrot.slane %v287_v29, 5  ;;  %1289 = vmatprep.subr.bf16.mxu0 %v1351_v42  ;;  %v1150_v51 = vld [vmem:[%s1419_s4 + $0x14] sm:$0x1] }
  0x22   : > { %1244 = vmatmul.mubr.msk.bf16.vlgmr.msra.gmra.mrb[0].mxu1 %vm356_vm0, %v1096_v16  ;;  %v277_v28 = vrot.slane %v276_v20, 4  ;;  %v295_v40 = vrot.slane %v293_v31, 5  ;;  %v300_v41 = vrot.slane %v298_v33, 4  ;;  %v1107_v47 = vcombine.low %v1426_v9, %v1429_v10  ;;  %v1350_v9 = vld [vmem:[%s1617_s1 + $0x18] sm:$0xff]   ;;  %v1155_v24 = vld [vmem:[%s1419_s4 + $0x28] sm:$0xf] }
  0x23   : > { %1252 = vmatpush3.bf16.msra.mxu1 %v1441_v19  ;;  %v268_v34 = vsel %vm1448_vm3, %v263_v23, %v267_v8  ;;  %v301_v19 = vshll.u32 %v1504_v22, 16  ;;  %v309_v45 = vrot.slane %v307_v37, 5  ;;  %v290_v48 = vor.u32 %v289_v39, %v286_v36  ;;  %v1151_v59 = vld [vmem:[%s1419_s4 + $0x18] sm:$0xf]  ;;  %v1152_v0 = vld [vmem:[%s1419_s4 + $0x1c] sm:$0x1] }
  0x24   : > { %1253 = vmatprep.subr.bf16.mxu1 %v1344_v5  ;;  %v282_v38 = vsel %vm1448_vm3, %v277_v28, %v281_v14  ;;  %v1108_v52 = vcombine.low %v1454_v30, %v1458_v32  ;;  %v1109_v53 = vcombine.low %v1476_v56, %v1479_v57  ;;  %v719_v10 = vshrl.u32 %v1147_v46, 16  ;;  %1290 = vmatpush3.bf16.msra.mxu0 %v1351_v42  ;;  %v1154_v14 = vld [vmem:[%s1419_s4 + $0x24] sm:$0x1]  ;;  %v1156_v31 = vld [vmem:[%s1419_s4 + $0x2c] sm:$0x1] }
  0x25   : > { %v1097_v43 = vcombine.low %v268_v34, %v282_v38  ;;  %v303_v44 = vrot.slane %v301_v19, 5  ;;  %v722_v55 = vshll.u32 %v1147_v46, 16  ;;  %v728_v58 = vshll.u32 %v1148_v49, 16  ;;  %v1157_v39 = vld [vmem:[%s1419_s4 + $0x30] sm:$0xf] }
  0x26   : > { %v291_v60 = vrot.slane %v290_v48, 4  ;;  %v733_v61 = vshrl.u32 %v1149_v50, 16  ;;  %v736_v62 = vshll.u32 %v1149_v50, 16  ;;  %v742_v63 = vshll.u32 %v1150_v51, 16  ;;  %v1159_v46 = vld [vmem:[%s1419_s4 + $0x38] sm:$0xf] }
  0x27   : > { %1254 = vmatpush3.bf16.msra.mxu1 %v1344_v5  ;;  %1247 = vmatprep.mubr.msk.bf16.mxu1 %vm356_vm0, %v1097_v43  ;;  %v304_v54 = vor.u32 %v303_v44, %v300_v41  ;;  %v721_v2 = vrot.slane %v719_v10, 4  ;;  %v724_v3 = vrot.slane %v722_v55, 5  ;;  %v730_v4 = vrot.slane %v728_v58, 5  ;;  %v1153_v5 = vld [vmem:[%s1419_s4 + $0x20] sm:$0xf] }
  0x28   : > { %1255 = vmatprep.subr.bf16.mxu1 %v1347_v35  ;;  %v296_v6 = vsel %vm1448_vm3, %v291_v60, %v295_v40  ;;  %v735_v7 = vrot.slane %v733_v61, 4  ;;  %v738_v8 = vrot.slane %v736_v62, 5  ;;  %v744_v11 = vrot.slane %v742_v63, 5  ;;  %v1158_v40 = vld [vmem:[%s1419_s4 + $0x34] sm:$0x1] }
  0x29   : > { %v305_v1 = vrot.slane %v304_v54, 4  ;;  %v725_v13 = vor.u32 %v724_v3, %v721_v2  ;;  %v747_v15 = vshrl.u32 %v1151_v59, 16  ;;  %v750_v16 = vshll.u32 %v1151_v59, 16  ;;  %v1160_v55 = vld [vmem:[%s1419_s4 + $0x3c] sm:$0x1] }
  0x2a   : > { %v739_v18 = vor.u32 %v738_v8, %v735_v7  ;;  %v756_v20 = vshll.u32 %v1152_v0, 16  ;;  %v761_v23 = vshrl.u32 %v1153_v5, 16  ;;  %v764_v29 = vshll.u32 %v1153_v5, 16  ;;  %v1161_v61 = vld [vmem:[%s1419_s4 + $0x40] sm:$0xf] }
  0x2b   : > { %1256 = vmatpush3.bf16.msra.mxu1 %v1347_v35  ;;  %v310_v12 = vsel %vm1448_vm3, %v305_v1, %v309_v45  ;;  %v726_v26 = vrot.slane %v725_v13, 4  ;;  %v749_v27 = vrot.slane %v747_v15, 4  ;;  %v752_v28 = vrot.slane %v750_v16, 5  ;;  %v1162_v2 = vld [vmem:[%s1419_s4 + $0x44] sm:$0x1] }
  0x2c   : > { %1257 = vmatprep.subr.bf16.mxu1 %v1350_v9  ;;  %v1098_v17 = vcombine.low %v296_v6, %v310_v12  ;;  %v740_v33 = vrot.slane %v739_v18, 4  ;;  %v758_v34 = vrot.slane %v756_v20, 5  ;;  %v763_v35 = vrot.slane %v761_v23, 4 }
  0x2d   : > { %v770_v36 = vshll.u32 %v1154_v14, 16  ;;  %v731_v19 = vsel %vm1448_vm3, %v726_v26, %v730_v4  ;;  %v753_v37 = vor.u32 %v752_v28, %v749_v27  ;;  %v766_v38 = vrot.slane %v764_v29, 5 }
  0x2e   : > { %1248 = vmatmul.mubr.msk.bf16.gmra.mrb[4].mxu1 %vm356_vm0, %v1098_v17  ;;  %v775_v41 = vshrl.u32 %v1155_v24, 16  ;;  %v745_v42 = vsel %vm1448_vm3, %v740_v33, %v744_v11  ;;  %v778_v44 = vshll.u32 %v1155_v24, 16  ;;  %v784_v45 = vshll.u32 %v1156_v31, 16 }
  0x2f   : > { %1258 = vmatpush3.bf16.msra.mxu1 %v1350_v9  ;;  %1259 = vmatprep.mubr.msk.bf16.mxu1 %vm356_vm0, %v1107_v47  ;;  %v772_v43 = vrot.slane %v770_v36, 5  ;;  %v1171_v48 = vcombine.low %v731_v19, %v745_v42  ;;  %v754_v49 = vrot.slane %v753_v37, 4  ;;  %v767_v50 = vor.u32 %v766_v38, %v763_v35 }
  0x30   : > { %v777_v51 = vrot.slane %v775_v41, 4  ;;  %v780_v47 = vrot.slane %v778_v44, 5  ;;  %v786_v54 = vrot.slane %v784_v45, 5  ;;  %v789_v9 = vshrl.u32 %v1157_v39, 16 }
  0x31   : > { %v792_v10 = vshll.u32 %v1157_v39, 16  ;;  %1291 = vmatprep.mubr.msk.bf16.mxu0 %vm356_vm0, %v1171_v48  ;;  %v759_v58 = vsel %vm1448_vm3, %v754_v49, %v758_v34  ;;  %v768_v59 = vrot.slane %v767_v50, 4  ;;  %v798_v60 = vshll.u32 %v1158_v40, 16  ;;  %v1183_v34 = vld [vmem:[%s1618_s2] ss:$0 sm:$0xff] }
  0x32   : > { %v803_v62 = vshrl.u32 %v1159_v46, 16  ;;  %v781_v63 = vor.u32 %v780_v47, %v777_v51  ;;  %v791_v0 = vrot.slane %v789_v9, 4  ;;  %v806_v3 = vshll.u32 %v1159_v46, 16 }
  0x33   : > { %v794_v1 = vrot.slane %v792_v10, 5  ;;  %v773_v4 = vsel %vm1448_vm3, %v768_v59, %v772_v43  ;;  %v800_v5 = vrot.slane %v798_v60, 5  ;;  %v812_v7 = vshll.u32 %v1160_v55, 16 }
  0x34   : > { %v805_v6 = vrot.slane %v803_v62, 4  ;;  %v1172_v8 = vcombine.low %v759_v58, %v773_v4  ;;  %v782_v11 = vrot.slane %v781_v63, 4  ;;  %v808_v13 = vrot.slane %v806_v3, 5 }
  0x35   : > { %v795_v12 = vor.u32 %v794_v1, %v791_v0  ;;  %v817_v14 = vshrl.u32 %v1161_v61, 16  ;;  %v820_v15 = vshll.u32 %v1161_v61, 16  ;;  %v826_v16 = vshll.u32 %v1162_v2, 16 }
  0x36   : > { %1260 = vmatmul.mubr.msk.bf16.vlgmr.msra.gmra.mrb[0].mxu1 %vm356_vm0, %v1108_v52  ;;  %1292 = vmatmul.mubr.msk.bf16.vlgmr.msra.gmra.mrb[0].mxu0 %vm356_vm0, %v1172_v8  ;;  %v787_v17 = vsel %vm1448_vm3, %v782_v11, %v786_v54  ;;  %v809_v30 = vor.u32 %v808_v13, %v805_v6  ;;  %v814_v32 = vrot.slane %v812_v7, 5  ;;  %v1110_v56 = vcombine.low %v1501_v21, %v1504_v22 }
  0x37   : > { %1263 = vmatprep.mubr.msk.bf16.mxu1 %vm356_vm0, %v1109_v53  ;;  %v796_v18 = vrot.slane %v795_v12, 4  ;;  %v819_v52 = vrot.slane %v817_v14, 4  ;;  %v822_v20 = vrot.slane %v820_v15, 5  ;;  %v828_v26 = vrot.slane %v826_v16, 5 }
  0x38   : > { %v810_v24 = vrot.slane %v809_v30, 4 }
  0x39   : > { %v801_v23 = vsel %vm1448_vm3, %v796_v18, %v800_v5  ;;  %v823_v53 = vor.u32 %v822_v20, %v819_v52 }
  0x3a   : > { %v1173_v57 = vcombine.low %v787_v17, %v801_v23  ;;  %v815_v27 = vsel %vm1448_vm3, %v810_v24, %v814_v32 }
  0x3b   : > { %v824_v28 = vrot.slane %v823_v53, 4 }
  0x3c   : > { %1295 = vmatprep.mubr.msk.bf16.mxu0 %vm356_vm0, %v1173_v57 }
  0x3d   : > { %v829_v29 = vsel %vm1448_vm3, %v824_v28, %v828_v26 }
  0x3e   : > { %1264 = vmatmul.mubr.msk.bf16.gmra.mrb[4].mxu1 %vm356_vm0, %v1110_v56  ;;  %v1174_v31 = vcombine.low %v815_v27, %v829_v29 }
  0x40   : > { %1296 = vmatmul.mubr.msk.bf16.gmra.mrb[4].mxu0 %vm356_vm0, %v1174_v31 }
 0x109   : > { %v1261_v33 = vpop.f32.mrb[0].mxu1  ;;  %v1293_v22 = vpop.f32.mrb[0].mxu0 }
 0x10a   : > { %v524_v21 = vpop.f32.mrb[1].mxu1  ;;  %v1299_v36 = vadd.f32 %v1293_v22, %v1261_v33  ;;  %v921_v19 = vpop.f32.mrb[1].mxu0 }
 0x10b   : > { %v1262_v35 = vpop.f32.mrb[2].mxu1  ;;  %v1300_v38 = vadd.f32 %v921_v19, %v524_v21  ;;  %v1294_v39 = vpop.f32.mrb[2].mxu0 }
 0x10c   : > { %v527_v37 = vpop.f32.mrb[3].mxu1  ;;  %v969_v40 = vadd.f32 %v1299_v36, %v1183_v34  ;;  %v1301_v25 = vadd.f32 %v1294_v39, %v1262_v35  ;;  %v924_v41 = vpop.f32.mrb[3].mxu0 }
 0x10d   : > { %v967_v42 = vadd.f32 %v1300_v38, %v1183_v34  ;;  %v1302_v43 = vadd.f32 %v924_v41, %v527_v37 }
 0x10e   : > { %v977_v44 = vmax.f32 %v969_v40, 0.0  ;;  %v970_v45 = vadd.f32 %v1301_v25, %v1183_v34 }
 0x10f   : > { %v975_v46 = vmax.f32 %v967_v42, 0.0  ;;  %v968_v48 = vadd.f32 %v1302_v43, %v1183_v34 }
 0x110   : > { %v1197_v50 = vpack.c.bf16 %v977_v44, %v977_v44  ;;  %v978_v51 = vmax.f32 %v970_v45, 0.0 }
 0x111   : > { %v1265_v49 = vpop.f32.mrb[4].mxu1  ;;  %v1195_v54 = vpack.c.bf16 %v975_v46, %v975_v46  ;;  %v976_v9 = vmax.f32 %v968_v48, 0.0 }
 0x112   : > { %v540_v47 = vpop.f32.mrb[5].mxu1  ;;  %1018 = vst.msk [vmem:[%s1595_s30 + $0x8] sm:$0xf] %vm1015_vm4, %v1197_v50  ;;  %v1198_v55 = vpack.c.bf16 %v978_v51, %v978_v51 }
 0x113   : > { %v1266_v10 = vpop.f32.mrb[6].mxu1  ;;  %1016 = vst.msk [vmem:[%s1595_s30] sm:$0xf] %vm1015_vm4, %v1195_v54  ;;  %v1196_v59 = vpack.c.bf16 %v976_v9, %v976_v9  ;;  %v1297_v60 = vpop.f32.mrb[4].mxu0 }
 0x114   : > { %v543_v58 = vpop.f32.mrb[7].mxu1  ;;  %1019 = vst.msk [vmem:[%s1595_s30 + $0xc] sm:$0xf] %vm1015_vm4, %v1198_v55  ;;  %v1303_v61 = vadd.f32 %v1297_v60, %v1265_v49  ;;  %v937_v62 = vpop.f32.mrb[5].mxu0 }
 0x115   : > { %1017 = vst.msk [vmem:[%s1595_s30 + $0x4] sm:$0xf] %vm1015_vm4, %v1196_v59  ;;  %v1304_v63 = vadd.f32 %v937_v62, %v540_v47  ;;  %v1298_v0 = vpop.f32.mrb[6].mxu0 }
 0x116   : > { %v973_v1 = vadd.f32 %v1303_v61, %v1183_v34  ;;  %v1305_v2 = vadd.f32 %v1298_v0, %v1266_v10  ;;  %v940_v3 = vpop.f32.mrb[7].mxu0 }
 0x117   : > { %v971_v4 = vadd.f32 %v1304_v63, %v1183_v34  ;;  %v1306_v5 = vadd.f32 %v940_v3, %v543_v58 }
 0x118   : > { %v981_v6 = vmax.f32 %v973_v1, 0.0  ;;  %v974_v7 = vadd.f32 %v1305_v2, %v1183_v34 }
 0x119   : > { %v979_v8 = vmax.f32 %v971_v4, 0.0  ;;  %v972_v11 = vadd.f32 %v1306_v5, %v1183_v34 }
 0x11a   : > { %v1201_v12 = vpack.c.bf16 %v981_v6, %v981_v6  ;;  %v982_v13 = vmax.f32 %v974_v7, 0.0 }
 0x11b   : > { %v1199_v14 = vpack.c.bf16 %v979_v8, %v979_v8  ;;  %v980_v15 = vmax.f32 %v972_v11, 0.0 }
 0x11c   : > { %1022 = vst.msk [vmem:[%s1595_s30 + $0x18] sm:$0xf] %vm1015_vm4, %v1201_v12  ;;  %v1202_v16 = vpack.c.bf16 %v982_v13, %v982_v13 }
 0x11d   : > { %1020 = vst.msk [vmem:[%s1595_s30 + $0x10] sm:$0xf] %vm1015_vm4, %v1199_v14  ;;  %v1200_v17 = vpack.c.bf16 %v980_v15, %v980_v15 }
 0x11e   : > { %1023 = vst.msk [vmem:[%s1595_s30 + $0x1c] sm:$0xf] %vm1015_vm4, %v1202_v16 }
 0x11f   : > { %1021 = vst.msk [vmem:[%s1595_s30 + $0x14] sm:$0xf] %vm1015_vm4, %v1200_v17 }
 0x120 PF: > { %s13_s12 = sadd.s32 1, %s1362_s12  }
 0x121   : > { %p10_p4 = scmp.ge.s32.totalorder %s13_s12, 4  }
 0x123   :  { %12 = sbr.rel (!%p10_p4) target bundleno = 1 (0x1), region = 66 }

// kernel: nature_cnn_forward.5
= control target key start
LH: loop header
LB: loop body
LE: loop exit
PB: predicated region body
PF: predicated region fallthrough
CT: control target
= control target key end

     0   :  { %s1293_s12 = smov 0   ;;  %s1522_s0 = inlined_call_operand.vmem [shape: bf16[2,4,4,128], index: 0, kind: input, shape index: {}]   ;;  %s1523_s1 = inlined_call_operand.vmem [shape: bf16[4,128,64], index: 1, kind: input, shape index: {}]   ;;  %s1524_s2 = inlined_call_operand.vmem [shape: f32[1,64], index: 2, kind: input, shape index: {}]   ;;  %s1525_s3 = inlined_call_operand.vmem [shape: bf16[2,9,64], index: 3, kind: output, shape index: {}]  }
   0x1 LB: > { %s982_s13 = sadd.s32 4294967295, %s1268_s12   ;;  %p986_p0 = scmp.ge.s32.totalorder %s1268_s12, 1  ;;  %s1268_s12 = sphi %s1293_s12, %s13_s12  }
   0x2   : > { %p137_p1 = scmp.lt.s32.totalorder %s1268_s12, 3 }
   0x4   : > { %p138_p2 = pnand %p986_p0, %p137_p1 }
   0x5   : > { %v1230_v0 = vld [vmem:[%s1523_s1 + $0x40] sm:$0xff] (!%p138_p2)   ;;  %v1270_v1 = vmov (!%p138_p2), 0.0   ;;  %v1232_v3 = vld [vmem:[%s1523_s1 + $0x48] sm:$0xff] (!%p138_p2)   ;;  %vm1271_vm0 = vmmov (!%p138_p2), 0   ;;  %p161_p3 = scmp.lt.s32.totalorder (!%p138_p2), %s982_s13, 1  ;;  %v1234_v5 = vld [vmem:[%s1523_s1 + $0x50] sm:$0xff] (!%p138_p2)   ;;  %v257_v9 = vlaneseq (!%p138_p2) }
   0x6   : > { %141 = sbr.rel (%p138_p2) target bundleno = 296 (0x128), region = 32  ;;  %1139 = vmatprep.subr.bf16.mxu0 (!%p138_p2), %v1270_v1  ;;  %1159 = vmatprep.subr.bf16.mxu1 (!%p138_p2), %v1270_v1  ;;  %v1231_v2 = vld [vmem:[%s1523_s1] sm:$0xff] (!%p138_p2)   ;;  %v1233_v4 = vld [vmem:[%s1523_s1 + $0x8] sm:$0xff] (!%p138_p2)   ;;  %v1235_v6 = vld [vmem:[%s1523_s1 + $0x10] sm:$0xff] (!%p138_p2)   ;;  %v1272_v18 = vmov (!%p138_p2), 1966171168  }
   0x7   : > { %1140 = vmatpush3.bf16.msra.mxu0 (!%p138_p2), %v1230_v0  ;;  %1155 = vmatprep.mubr.msk.bf16.mxu0 (!%p138_p2), %vm1271_vm0, %v1270_v1  ;;  %v1236_v7 = vld [vmem:[%s1523_s1 + $0x58] sm:$0xff] (!%p138_p2)   ;;  %v1238_v10 = vld [vmem:[%s1523_s1 + $0x60] sm:$0xff] (!%p138_p2)   ;;  %v258_v12 = vshrl.u32 (!%p138_p2), %v257_v9, 7  ;;  %v1240_v13 = vld [vmem:[%s1523_s1 + $0x68] sm:$0xff] (!%p138_p2)   ;;  %v255_v19 = vunpack.c.l.s4 (!%p138_p2), %v1272_v18  ;;  %vm921_vm1 = vcmask (!%p138_p2), 516096   ;;  %vm919_vm3 = vcmask (!%p138_p2), 519168  }
   0x8   : > { %1160 = vmatpush3.bf16.msra.mxu1 (!%p138_p2), %v1231_v2  ;;  %1141 = vmatprep.subr.bf16.mxu0 (!%p138_p2), %v1270_v1  ;;  %v1237_v8 = vld [vmem:[%s1523_s1 + $0x18] sm:$0xff] (!%p138_p2)   ;;  %v1239_v11 = vld [vmem:[%s1523_s1 + $0x20] sm:$0xff] (!%p138_p2)   ;;  %v1241_v23 = vld [vmem:[%s1523_s1 + $0x28] sm:$0xff] (!%p138_p2)   ;;  %vm922_vm2 = vsmask.f32 (!%p138_p2), 256 }
   0x9   : > { %1161 = vmatprep.subr.bf16.mxu1 (!%p138_p2), %v1270_v1  ;;  %1175 = vmatprep.mubr.msk.bf16.mxu1 (!%p138_p2), %vm1271_vm0, %v1270_v1  ;;  %v256_v28 = vunpack.c.0.s8 (!%p138_p2), %v255_v19  ;;  %v1242_v35 = vld [vmem:[%s1523_s1 + $0x70] sm:$0xff] (!%p138_p2)   ;;  %v1244_v48 = vld [vmem:[%s1523_s1 + $0x78] sm:$0xff] (!%p138_p2)   ;;  %v1246_v57 = vld [vmem:[%s1523_s1 + $0x80] sm:$0xff] (!%p138_p2)  }
   0xa   : > { %v1243_v39 = vld [vmem:[%s1523_s1 + $0x30] sm:$0xff] (!%p138_p2)   ;;  %v1245_v51 = vld [vmem:[%s1523_s1 + $0x38] sm:$0xff] (!%p138_p2)   ;;  %v1247_v59 = vld [vmem:[%s1523_s1 + $0xc0] sm:$0xff] (!%p138_p2)  }
   0xb   : > { %1142 = vmatpush3.bf16.msra.mxu0 (!%p138_p2), %v1232_v3  ;;  %v1394_v36 = vsub.s32 (!%p138_p2), %v256_v28, %v258_v12  ;;  %v1248_v60 = vld [vmem:[%s1523_s1 + $0x88] sm:$0xff] (!%p138_p2)   ;;  %v1250_v63 = vld [vmem:[%s1523_s1 + $0x90] sm:$0xff] (!%p138_p2)   ;;  %v1253_v9 = vld [vmem:[%s1523_s1 + $0xd8] sm:$0xff] (!%p138_p2)  }
   0xc   : > { %1162 = vmatpush3.bf16.msra.mxu1 (!%p138_p2), %v1233_v4  ;;  %1143 = vmatprep.subr.bf16.mxu0 (!%p138_p2), %v1270_v1  ;;  %v1249_v61 = vld [vmem:[%s1523_s1 + $0xc8] sm:$0xff] (!%p138_p2)   ;;  %v1251_v4 = vld [vmem:[%s1523_s1 + $0xd0] sm:$0xff] (!%p138_p2)   ;;  %v1254_v12 = vld [vmem:[%s1523_s1 + $0xa0] sm:$0xff] (!%p138_p2)  }
   0xd   : > { %s1527_s13 = smov (!%p161_p3, %s982_s13), 1  ;;  %1163 = vmatprep.subr.bf16.mxu1 %v1270_v1  ;;  %v1256_v19 = vld [vmem:[%s1523_s1 + $0xa8] sm:$0xff]   ;;  %vm923_vm4 = vmand %vm921_vm1, %vm922_vm2 }
   0xe   : > { %s1099_s28 = sshll.u32 %s1527_s13, 3 }
   0xf   : > { %1144 = vmatpush3.bf16.msra.mxu0 %v1234_v5  ;;  %s1345_s6 = scalar_lea.vmem %s1522_s0, %s1099_s28  ;;  %s170_s11 = scalar_lea.vmem %s1525_s3, %s1099_s28 }
  0x10   : > { %1164 = vmatpush3.bf16.msra.mxu1 %v1235_v6  ;;  %1145 = vmatprep.subr.bf16.mxu0 %v1270_v1  ;;  %v991_v14 = vld.sshfl [vmem:[%s1345_s6] sm:$0x11 pattern:$0x75316420]  ;;  %v1252_v6 = vld [vmem:[%s1523_s1 + $0x98] sm:$0xff]  }
  0x11   : > { %1165 = vmatprep.subr.bf16.mxu1 %v1270_v1  ;;  %v1360_v15 = vld.sshfl [vmem:[%s1345_s6 + $0x2] sm:$0x11 pattern:$0x75316420]  ;;  %v185_v16 = vcombine.high %v991_v14, %v991_v14  ;;  %v203_v17 = vunpack.i.h.s16 %v991_v14 }
  0x12   : > { %v1363_v20 = vld.sshfl [vmem:[%s1345_s6 + $0x4] sm:$0x11 pattern:$0x75316420]  ;;  %v1367_v21 = vcombine.high %v1360_v15, %v1360_v15  ;;  %v206_v22 = vunpack.i.h.s16 %v1360_v15 }
  0x13   : > { %1146 = vmatpush3.bf16.msra.mxu0 %v1236_v7  ;;  %v1376_v24 = vcombine.high %v1363_v20, %v1363_v20  ;;  %v209_v25 = vunpack.i.h.s16 %v1363_v20  ;;  %v227_v26 = vunpack.i.h.s16 %v185_v16  ;;  %v1010_v27 = vpack.i.b16 %v185_v16, %v203_v17  ;;  %v1035_v62 = vld.sshfl [vmem:[%s1345_s6 + $0x6] sm:$0x11 pattern:$0x75316420] }
  0x14   : > { %1166 = vmatpush3.bf16.msra.mxu1 %v1237_v8  ;;  %1147 = vmatprep.subr.bf16.mxu0 %v1270_v1  ;;  %v1020_v29 = vpack.i.b16 %v1360_v15, %v185_v16  ;;  %v1382_v30 = vpack.i.b16 %v1367_v21, %v206_v22  ;;  %v545_v0 = vcombine.high %v1035_v62, %v1035_v62  ;;  %v740_v2 = vunpack.i.h.s16 %v1367_v21  ;;  %v1255_v16 = vld [vmem:[%s1523_s1 + $0xe0] sm:$0xff]  }
  0x15   : > { %1167 = vmatprep.subr.bf16.mxu1 %v1270_v1  ;;  %v229_v31 = vunpack.i.h.s16 %v1376_v24  ;;  %v248_v32 = vpack.i.b16 %v206_v22, %v227_v26  ;;  %v1388_v33 = vpack.i.b16 %v1376_v24, %v209_v25  ;;  %v210_v34 = vunpack.i.l.s16 %v1376_v24  ;;  %v1258_v26 = vld [vmem:[%s1523_s1 + $0xb0] sm:$0xff]  }
  0x16   : > { %v386_v37 = vcombine.low %v991_v14, %v1020_v29  ;;  %v387_v38 = vcombine.low %v1382_v30, %v1363_v20  ;;  %v744_v3 = vunpack.i.h.s16 %v1035_v62  ;;  %v1052_v5 = vpack.i.b16 %v1363_v20, %v1367_v21  ;;  %v1259_v29 = vld [vmem:[%s1523_s1 + $0xf0] sm:$0xff]  }
  0x17   : > { %1148 = vmatpush3.bf16.msra.mxu0 %v1238_v10  ;;  %v252_v40 = vcombine.low %v1010_v27, %v248_v32  ;;  %v253_v41 = vcombine.low %v1367_v21, %v1388_v33  ;;  %v274_v42 = vrot.slane %v229_v31, %v1394_v36  ;;  %v408_v45 = vrot.slane %v210_v34, %v1394_v36  ;;  %v1260_v32 = vld [vmem:[%s1523_s1 + $0xb8] sm:$0xff]  }
  0x18   : > { %1168 = vmatpush3.bf16.msra.mxu1 %v1239_v11  ;;  %1149 = vmatprep.subr.bf16.mxu0 %v1270_v1  ;;  %v394_v43 = vrot.slane %v386_v37, %v1394_v36  ;;  %v401_v44 = vrot.slane %v387_v38, %v1394_v36  ;;  %v765_v7 = vpack.i.b16 %v209_v25, %v740_v2  ;;  %v746_v20 = vunpack.i.h.s16 %v545_v0  ;;  %v924_v2 = vld [vmem:[%s170_s11 + $0x4] sm:$0x1] }
  0x19   : > { %1169 = vmatprep.subr.bf16.mxu1 %v1270_v1  ;;  %v260_v46 = vrot.slane %v252_v40, %v1394_v36  ;;  %v267_v47 = vrot.slane %v253_v41, %v1394_v36  ;;  %v423_v50 = vrot.slane %v408_v45, %v1394_v36  ;;  %v289_v53 = vrot.slane %v274_v42, %v1394_v36 }
  0x1a   : > { %v409_v49 = vcombine.low %v394_v43, %v401_v44  ;;  %v1085_v8 = vpack.i.b16 %v545_v0, %v744_v3  ;;  %v577_v10 = vcombine.low %v1360_v15, %v1052_v5  ;;  %v578_v11 = vcombine.low %v1388_v33, %v1035_v62 }
  0x1b   : > { %1150 = vmatpush3.bf16.msra.mxu0 %v1240_v13  ;;  %v275_v52 = vcombine.low %v260_v46, %v267_v47  ;;  %v769_v13 = vcombine.low %v1382_v30, %v765_v7  ;;  %v554_v15 = vunpack.i.l.s16 %v545_v0  ;;  %v791_v27 = vrot.slane %v746_v20, %v1394_v36 }
  0x1c   : > { %1170 = vmatpush3.bf16.msra.mxu1 %v1241_v23  ;;  %1151 = vmatprep.subr.bf16.mxu0 %v1270_v1  ;;  %v416_v54 = vrot.slane %v409_v49, %v1394_v36  ;;  %v770_v14 = vcombine.low %v1376_v24, %v1085_v8  ;;  %v585_v17 = vrot.slane %v577_v10, %v1394_v36  ;;  %v1257_v23 = vld [vmem:[%s1523_s1 + $0xe8] sm:$0xff]  }
  0x1d   : > { %1171 = vmatprep.subr.bf16.mxu1 %v1270_v1  ;;  %v282_v55 = vrot.slane %v275_v52, %v1394_v36  ;;  %v592_v18 = vrot.slane %v578_v11, %v1394_v36  ;;  %v777_v21 = vrot.slane %v769_v13, %v1394_v36  ;;  %v599_v24 = vrot.slane %v554_v15, %v1394_v36 }
  0x1e   : > { %v424_v56 = vcombine.low %v416_v54, %v423_v50  ;;  %v784_v22 = vrot.slane %v770_v14, %v1394_v36  ;;  %v806_v34 = vrot.slane %v791_v27, %v1394_v36 }
  0x1f   : > { %1152 = vmatpush3.bf16.msra.mxu0 %v1242_v35  ;;  %v290_v58 = vcombine.low %v282_v55, %v289_v53  ;;  %v600_v25 = vcombine.low %v585_v17, %v592_v18  ;;  %v614_v31 = vrot.slane %v599_v24, %v1394_v36  ;;  %v1261_v35 = vld [vmem:[%s1523_s1 + $0xf8] sm:$0xff]  }
  0x20   : > { %1172 = vmatpush3.bf16.msra.mxu1 %v1243_v39  ;;  %1153 = vmatprep.subr.bf16.mxu0 %v1270_v1  ;;  %v792_v28 = vcombine.low %v777_v21, %v784_v22 }
  0x21   : > { %1173 = vmatprep.subr.bf16.mxu1 %v1270_v1  ;;  %v607_v30 = vrot.slane %v600_v25, %v1394_v36 }
  0x22   : > { %v799_v33 = vrot.slane %v792_v28, %v1394_v36 }
  0x23   : > { %1154 = vmatpush3.bf16.msra.mxu0 %v1244_v48  ;;  %v615_v37 = vcombine.low %v607_v30, %v614_v31 }
  0x24   : > { %1174 = vmatpush3.bf16.msra.mxu1 %v1245_v51  ;;  %1179 = vmatprep.subr.bf16.mxu0 %v1270_v1  ;;  %v807_v38 = vcombine.low %v799_v33, %v806_v34  ;;  %v1094_v51 = vld [vmem:[%s1524_s2] ss:$0 sm:$0xff] }
  0x25   : > { %1199 = vmatprep.subr.bf16.mxu1 %v1270_v1 }
  0x26   : > { %1156 = vmatmul.mubr.bf16.vlgmr.msra.gmra.mrb[0].mxu0 %v290_v58 }
  0x27   : > { %1176 = vmatmul.mubr.bf16.vlgmr.msra.gmra.mrb[0].mxu1 %v424_v56  ;;  %1180 = vmatpush3.bf16.msra.mxu0 %v1246_v57 }
  0x28   : > { %1200 = vmatpush3.bf16.msra.mxu1 %v1247_v59  ;;  %1181 = vmatprep.subr.bf16.mxu0 %v1270_v1 }
  0x29   : > { %1201 = vmatprep.subr.bf16.mxu1 %v1270_v1  ;;  %1195 = vmatprep.mubr.msk.bf16.mxu0 %vm1271_vm0, %v1270_v1 }
  0x2a   : > { %1215 = vmatprep.mubr.msk.bf16.mxu1 %vm1271_vm0, %v1270_v1 }
  0x2b   : > { %1182 = vmatpush3.bf16.msra.mxu0 %v1248_v60 }
  0x2c   : > { %1202 = vmatpush3.bf16.msra.mxu1 %v1249_v61  ;;  %1183 = vmatprep.subr.bf16.mxu0 %v1270_v1 }
  0x2d   : > { %1203 = vmatprep.subr.bf16.mxu1 %v1270_v1 }
  0x2f   : > { %1184 = vmatpush3.bf16.msra.mxu0 %v1250_v63 }
  0x30   : > { %1204 = vmatpush3.bf16.msra.mxu1 %v1251_v4  ;;  %1185 = vmatprep.subr.bf16.mxu0 %v1270_v1 }
  0x31   : > { %1205 = vmatprep.subr.bf16.mxu1 %v1270_v1 }
  0x33   : > { %1186 = vmatpush3.bf16.msra.mxu0 %v1252_v6 }
  0x34   : > { %1206 = vmatpush3.bf16.msra.mxu1 %v1253_v9  ;;  %1187 = vmatprep.subr.bf16.mxu0 %v1270_v1 }
  0x35   : > { %1207 = vmatprep.subr.bf16.mxu1 %v1270_v1 }
  0x37   : > { %1188 = vmatpush3.bf16.msra.mxu0 %v1254_v12 }
  0x38   : > { %1208 = vmatpush3.bf16.msra.mxu1 %v1255_v16  ;;  %1189 = vmatprep.subr.bf16.mxu0 %v1270_v1 }
  0x39   : > { %1209 = vmatprep.subr.bf16.mxu1 %v1270_v1 }
  0x3b   : > { %1190 = vmatpush3.bf16.msra.mxu0 %v1256_v19 }
  0x3c   : > { %1210 = vmatpush3.bf16.msra.mxu1 %v1257_v23  ;;  %1191 = vmatprep.subr.bf16.mxu0 %v1270_v1 }
  0x3d   : > { %1211 = vmatprep.subr.bf16.mxu1 %v1270_v1 }
  0x3f   : > { %1192 = vmatpush3.bf16.msra.mxu0 %v1258_v26 }
  0x40   : > { %1212 = vmatpush3.bf16.msra.mxu1 %v1259_v29  ;;  %1193 = vmatprep.subr.bf16.mxu0 %v1270_v1 }
  0x41   : > { %1213 = vmatprep.subr.bf16.mxu1 %v1270_v1 }
  0x43   : > { %1194 = vmatpush3.bf16.msra.mxu0 %v1260_v32 }
  0x44   : > { %1214 = vmatpush3.bf16.msra.mxu1 %v1261_v35 }
  0x46   : > { %1196 = vmatmul.mubr.bf16.vlgmr.msra.gmra.mrb[4].mxu0 %v615_v37 }
  0x47   : > { %1216 = vmatmul.mubr.bf16.vlgmr.msra.gmra.mrb[4].mxu1 %v807_v38 }
  0xf9   : > { %v374_v39 = vpop.f32.mrb[0].mxu0 }
  0xfa   : > { %v508_v40 = vpop.f32.mrb[0].mxu1  ;;  %v1157_v41 = vpop.f32.mrb[1].mxu0 }
  0xfb   : > { %v509_v42 = vadd.f32 %v508_v40, %v374_v39  ;;  %v1177_v36 = vpop.f32.mrb[1].mxu1  ;;  %v377_v43 = vpop.f32.mrb[2].mxu0 }
  0xfc   : > { %v511_v44 = vpop.f32.mrb[2].mxu1  ;;  %v1158_v45 = vpop.f32.mrb[3].mxu0 }
  0xfd   : > { %v512_v46 = vadd.f32 %v511_v44, %v377_v43  ;;  %v1178_v47 = vpop.f32.mrb[3].mxu1 }
 0x119   : > { %v699_v48 = vpop.f32.mrb[4].mxu0 }
 0x11a   : > { %v706_v49 = vadd.f32 %v699_v48, %v509_v42  ;;  %v891_v1 = vpop.f32.mrb[4].mxu1  ;;  %v1197_v50 = vpop.f32.mrb[5].mxu0 }
 0x11b   : > { %v1217_v52 = vpop.f32.mrb[5].mxu1  ;;  %v702_v53 = vpop.f32.mrb[6].mxu0 }
 0x11c   : > { %v898_v54 = vadd.f32 %v891_v1, %v706_v49  ;;  %v707_v55 = vadd.f32 %v702_v53, %v512_v46  ;;  %v894_v56 = vpop.f32.mrb[6].mxu1  ;;  %v1198_v57 = vpop.f32.mrb[7].mxu0 }
 0x11d   : > { %v1218_v58 = vpop.f32.mrb[7].mxu1 }
 0x11e   : > { %v907_v59 = vadd.f32 %v1094_v51, %v898_v54  ;;  %v899_v60 = vadd.f32 %v894_v56, %v707_v55 }
 0x120   : > { %v909_v61 = vmax.f32 %v907_v59, 0.0  ;;  %v908_v62 = vadd.f32 %v1094_v51, %v899_v60 }
 0x122   : > { %v1101_v63 = vpack.c.bf16 %v909_v61, %v909_v61  ;;  %v910_v0 = vmax.f32 %v908_v62, 0.0 }
 0x124   : > { %920 = vst.msk [vmem:[%s170_s11] sm:$0xf] %vm919_vm3, %v1101_v63  ;;  %v1102_v3 = vpack.c.bf16 %v910_v0, %v910_v0 }
 0x126   : > { %v925_v4 = vsel %vm923_vm4, %v1102_v3, %v924_v2 }
 0x127   : > { %926 = vst [vmem:[%s170_s11 + $0x4] sm:$0x1] %v925_v4 }
 0x128 PF: > { %s13_s12 = sadd.s32 1, %s1268_s12  }
 0x129   : > { %p10_p4 = scmp.ge.s32.totalorder %s13_s12, 4  }
 0x12b   :  { %12 = sbr.rel (!%p10_p4) target bundleno = 1 (0x1), region = 66 }

// kernel: nature_cnn_forward.6
= control target key start
LH: loop header
LB: loop body
LE: loop exit
PB: predicated region body
PF: predicated region fallthrough
CT: control target
= control target key end

     0   :  { %s1340_s12 = smov 0   ;;  %s1548_s0 = inlined_call_operand.vmem [shape: bf16[2,3,3,64], index: 0, kind: input, shape index: {}]   ;;  %s1549_s1 = inlined_call_operand.vmem [shape: bf16[9,64,64], index: 1, kind: input, shape index: {}]   ;;  %s1550_s2 = inlined_call_operand.vmem [shape: f32[1,64], index: 2, kind: input, shape index: {}]   ;;  %s1551_s3 = inlined_call_operand.vmem [shape: bf16[2,1,64], index: 3, kind: output, shape index: {}]  }
   0x1 LB: > { %s984_s13 = sadd.s32 4294967295, %s1315_s12   ;;  %p988_p0 = scmp.ge.s32.totalorder %s1315_s12, 1  ;;  %s1315_s12 = sphi %s1340_s12, %s13_s12  }
   0x2   : > { %p137_p1 = scmp.lt.s32.totalorder %s1315_s12, 3 }
   0x4   : > { %p138_p2 = pnand %p988_p0, %p137_p1 }
   0x5   : > { %v1273_v0 = vld [vmem:[%s1549_s1 + $0x20] sm:$0xff] (!%p138_p2)   ;;  %v1317_v1 = vmov (!%p138_p2), 0.0   ;;  %v1275_v3 = vld [vmem:[%s1549_s1 + $0x28] sm:$0xff] (!%p138_p2)   ;;  %vm1318_vm0 = vmmov (!%p138_p2), 0   ;;  %p159_p3 = scmp.lt.s32.totalorder (!%p138_p2), %s984_s13, 1  ;;  %v190_v5 = vlaneseq (!%p138_p2)  ;;  %v1277_v6 = vld [vmem:[%s1549_s1 + $0x30] sm:$0xff] (!%p138_p2)  }
   0x6   : > { %141 = sbr.rel (%p138_p2) target bundleno = 308 (0x134), region = 32  ;;  %1153 = vmatprep.subr.bf16.mxu0 (!%p138_p2), %v1317_v1  ;;  %1165 = vmatprep.subr.bf16.mxu1 (!%p138_p2), %v1317_v1  ;;  %v1274_v2 = vld [vmem:[%s1549_s1] sm:$0xff] (!%p138_p2)   ;;  %v1276_v4 = vld [vmem:[%s1549_s1 + $0x8] sm:$0xff] (!%p138_p2)   ;;  %v1278_v7 = vld [vmem:[%s1549_s1 + $0x10] sm:$0xff] (!%p138_p2)   ;;  %v1319_v8 = vmov (!%p138_p2), 1983009808  }
   0x7   : > { %1154 = vmatpush3.bf16.msra.mxu0 (!%p138_p2), %v1273_v0  ;;  %1161 = vmatprep.mubr.msk.bf16.mxu0 (!%p138_p2), %vm1318_vm0, %v1317_v1  ;;  %v188_v9 = vunpack.c.l.s4 (!%p138_p2), %v1319_v8  ;;  %v191_v10 = vshrl.u32 (!%p138_p2), %v190_v5, 7  ;;  %v1279_v11 = vld [vmem:[%s1549_s1 + $0x38] sm:$0xff] (!%p138_p2)   ;;  %vm221_vm1 = vcmask (!%p138_p2), 523264   ;;  %v1282_v17 = vld [vmem:[%s1549_s1 + $0x60] sm:$0xff] (!%p138_p2)   ;;  %v1284_v20 = vld [vmem:[%s1549_s1 + $0x68] sm:$0xff] (!%p138_p2)   ;;  %vm931_vm2 = vcmask (!%p138_p2), 516096  }
   0x8   : > { %1166 = vmatpush3.bf16.msra.mxu1 (!%p138_p2), %v1274_v2  ;;  %1155 = vmatprep.subr.bf16.mxu0 (!%p138_p2), %v1317_v1  ;;  %v1280_v12 = vld [vmem:[%s1549_s1 + $0x18] sm:$0xff] (!%p138_p2)   ;;  %v1281_v18 = vld [vmem:[%s1549_s1 + $0x40] sm:$0xff] (!%p138_p2)   ;;  %v1283_v21 = vld [vmem:[%s1549_s1 + $0x48] sm:$0xff] (!%p138_p2)   ;;  %vm932_vm3 = vsmask.f32 (!%p138_p2), 256 }
   0x9   : > { %1167 = vmatprep.subr.bf16.mxu1 (!%p138_p2), %v1317_v1  ;;  %1173 = vmatprep.mubr.msk.bf16.mxu1 (!%p138_p2), %vm1318_vm0, %v1317_v1  ;;  %v189_v13 = vunpack.c.0.s8 (!%p138_p2), %v188_v9  ;;  %v1286_v22 = vld [vmem:[%s1549_s1 + $0x70] sm:$0xff] (!%p138_p2)   ;;  %v1288_v24 = vld [vmem:[%s1549_s1 + $0x78] sm:$0xff] (!%p138_p2)   ;;  %v1290_v29 = vld [vmem:[%s1549_s1 + $0xa0] sm:$0xff] (!%p138_p2)  }
   0xa   : > { %v1285_v23 = vld [vmem:[%s1549_s1 + $0x50] sm:$0xff] (!%p138_p2)   ;;  %v1287_v26 = vld [vmem:[%s1549_s1 + $0x58] sm:$0xff] (!%p138_p2)   ;;  %v1289_v30 = vld [vmem:[%s1549_s1 + $0x80] sm:$0xff] (!%p138_p2)  }
   0xb   : > { %1156 = vmatpush3.bf16.msra.mxu0 (!%p138_p2), %v1275_v3  ;;  %v1393_v15 = vsub.s32 (!%p138_p2), %v189_v13, %v191_v10  ;;  %v1292_v31 = vld [vmem:[%s1549_s1 + $0xa8] sm:$0xff] (!%p138_p2)   ;;  %v1294_v33 = vld [vmem:[%s1549_s1 + $0xb0] sm:$0xff] (!%p138_p2)   ;;  %v1296_v36 = vld [vmem:[%s1549_s1 + $0xb8] sm:$0xff] (!%p138_p2)  }
   0xc   : > { %1168 = vmatpush3.bf16.msra.mxu1 (!%p138_p2), %v1276_v4  ;;  %1157 = vmatprep.subr.bf16.mxu0 (!%p138_p2), %v1317_v1  ;;  %v1291_v32 = vld [vmem:[%s1549_s1 + $0x88] sm:$0xff] (!%p138_p2)   ;;  %v1293_v34 = vld [vmem:[%s1549_s1 + $0x90] sm:$0xff] (!%p138_p2)   ;;  %v1295_v38 = vld [vmem:[%s1549_s1 + $0x98] sm:$0xff] (!%p138_p2)  }
   0xd   : > { %s1553_s13 = smov (!%p159_p3, %s984_s13), 1  ;;  %1169 = vmatprep.subr.bf16.mxu1 %v1317_v1  ;;  %v1298_v41 = vld [vmem:[%s1549_s1 + $0xe0] sm:$0xff]   ;;  %v1300_v43 = vld [vmem:[%s1549_s1 + $0xe8] sm:$0xff]   ;;  %v1302_v45 = vld [vmem:[%s1549_s1 + $0xf0] sm:$0xff]  }
   0xe   : > { %s1261_s24 = smul.u32 6, %s1553_s13  ;;  %v1297_v42 = vld [vmem:[%s1549_s1 + $0xc0] sm:$0xff]   ;;  %v1299_v44 = vld [vmem:[%s1549_s1 + $0xc8] sm:$0xff]   ;;  %v1301_v47 = vld [vmem:[%s1549_s1 + $0xd0] sm:$0xff]   ;;  %s166_s20 = scalar_lea.vmem %s1551_s3, %s1553_s13 }
   0xf   : > { %1158 = vmatpush3.bf16.msra.mxu0 %v1277_v6  ;;  %v1304_v49 = vld [vmem:[%s1549_s1 + $0xf8] sm:$0xff]   ;;  %v1305_v52 = vld [vmem:[%s1549_s1 + $0x100] sm:$0xff]   ;;  %v1306_v53 = vld [vmem:[%s1549_s1 + $0x108] sm:$0xff]  }
  0x10   : > { %s1382_s29 = scalar_lea.vmem %s1548_s0, %s1261_s24  ;;  %1170 = vmatpush3.bf16.msra.mxu1 %v1278_v7  ;;  %1159 = vmatprep.subr.bf16.mxu0 %v1317_v1  ;;  %v1303_v50 = vld [vmem:[%s1549_s1 + $0xd8] sm:$0xff]   ;;  %v1307_v54 = vld [vmem:[%s1549_s1 + $0x110] sm:$0xff]   ;;  %vm933_vm4 = vmand %vm931_vm2, %vm932_vm3 }
  0x11   : > { %1171 = vmatprep.subr.bf16.mxu1 %v1317_v1  ;;  %v168_v14 = vld [vmem:[%s1382_s29] sm:$0x1]  ;;  %v1016_v25 = vld.sshfl [vmem:[%s1382_s29] sm:$0x2 pattern:$0x76325410] }
  0x12   : > { %v193_v16 = vrot.slane %v168_v14, %v1393_v15  ;;  %v1022_v27 = vld [vmem:[%s1382_s29 + $0x2] sm:$0x1]  ;;  %v350_v28 = vrot.slane %v1016_v25, 1  ;;  %v1064_v46 = vld [vmem:[%s1382_s29 + $0x4] sm:$0x1]  ;;  %v1308_v55 = vld [vmem:[%s1549_s1 + $0x118] sm:$0xff]  }
  0x13   : > { %1160 = vmatpush3.bf16.msra.mxu0 %v1279_v11  ;;  %v514_v35 = vrot.slane %v1022_v27, %v1393_v15  ;;  %v1058_v37 = vld.sshfl [vmem:[%s1382_s29 + $0x2] sm:$0x2 pattern:$0x76325410]  ;;  %v768_v48 = vrot.slane %v1064_v46, %v1393_v15 }
  0x14   : > { %1172 = vmatpush3.bf16.msra.mxu1 %v1280_v12  ;;  %1177 = vmatprep.subr.bf16.mxu0 %v1317_v1  ;;  %v195_v19 = vshrl.u32 %v193_v16, 16  ;;  %v604_v39 = vrot.slane %v1058_v37, 1  ;;  %v1100_v56 = vld.sshfl [vmem:[%s1382_s29 + $0x4] sm:$0x2 pattern:$0x76325410] }
  0x15   : > { %1189 = vmatprep.subr.bf16.mxu1 %v1317_v1  ;;  %v516_v40 = vshrl.u32 %v514_v35, 16  ;;  %v770_v51 = vshrl.u32 %v768_v48, 16  ;;  %v858_v57 = vrot.slane %v1100_v56, 1 }
  0x16   : > { %1162 = vmatmul.mubr.msk.bf16.vlgmr.msra.gmra.mrb[0].mxu0 %vm221_vm1, %v195_v19 }
  0x17   : > { %1174 = vmatmul.mubr.msk.bf16.vlgmr.msra.gmra.mrb[0].mxu1 %vm221_vm1, %v168_v14  ;;  %1178 = vmatpush3.bf16.msra.mxu0 %v1281_v18 }
  0x18   : > { %1190 = vmatpush3.bf16.msra.mxu1 %v1282_v17  ;;  %1179 = vmatprep.subr.bf16.mxu0 %v1317_v1 }
  0x19   : > { %1191 = vmatprep.subr.bf16.mxu1 %v1317_v1  ;;  %1185 = vmatprep.mubr.msk.bf16.mxu0 %vm1318_vm0, %v1317_v1 }
  0x1a   : > { %1197 = vmatprep.mubr.msk.bf16.mxu1 %vm1318_vm0, %v1317_v1 }
  0x1b   : > { %1180 = vmatpush3.bf16.msra.mxu0 %v1283_v21 }
  0x1c   : > { %1192 = vmatpush3.bf16.msra.mxu1 %v1284_v20  ;;  %1181 = vmatprep.subr.bf16.mxu0 %v1317_v1 }
  0x1d   : > { %1193 = vmatprep.subr.bf16.mxu1 %v1317_v1 }
  0x1f   : > { %1182 = vmatpush3.bf16.msra.mxu0 %v1285_v23 }
  0x20   : > { %1194 = vmatpush3.bf16.msra.mxu1 %v1286_v22  ;;  %1183 = vmatprep.subr.bf16.mxu0 %v1317_v1 }
  0x21   : > { %1195 = vmatprep.subr.bf16.mxu1 %v1317_v1 }
  0x23   : > { %1184 = vmatpush3.bf16.msra.mxu0 %v1287_v26 }
  0x24   : > { %1196 = vmatpush3.bf16.msra.mxu1 %v1288_v24  ;;  %1201 = vmatprep.subr.bf16.mxu0 %v1317_v1 }
  0x25   : > { %1213 = vmatprep.subr.bf16.mxu1 %v1317_v1 }
  0x26   : > { %1186 = vmatmul.mubr.msk.bf16.vlgmr.msra.gmra.mrb[4].mxu0 %vm221_vm1, %v350_v28 }
  0x27   : > { %1198 = vmatmul.mubr.msk.bf16.vlgmr.msra.gmra.mrb[4].mxu1 %vm221_vm1, %v1022_v27  ;;  %1202 = vmatpush3.bf16.msra.mxu0 %v1289_v30 }
  0x28   : > { %1214 = vmatpush3.bf16.msra.mxu1 %v1290_v29  ;;  %1203 = vmatprep.subr.bf16.mxu0 %v1317_v1 }
  0x29   : > { %1215 = vmatprep.subr.bf16.mxu1 %v1317_v1  ;;  %1209 = vmatprep.mubr.msk.bf16.mxu0 %vm1318_vm0, %v1317_v1 }
  0x2a   : > { %1221 = vmatprep.mubr.msk.bf16.mxu1 %vm1318_vm0, %v1317_v1 }
  0x2b   : > { %1204 = vmatpush3.bf16.msra.mxu0 %v1291_v32 }
  0x2c   : > { %1216 = vmatpush3.bf16.msra.mxu1 %v1292_v31  ;;  %1205 = vmatprep.subr.bf16.mxu0 %v1317_v1 }
  0x2d   : > { %1217 = vmatprep.subr.bf16.mxu1 %v1317_v1 }
  0x2f   : > { %1206 = vmatpush3.bf16.msra.mxu0 %v1293_v34  ;;  %v927_v34 = vld [vmem:[%s1550_s2] sm:$0x1] }
  0x30   : > { %1218 = vmatpush3.bf16.msra.mxu1 %v1294_v33  ;;  %1207 = vmatprep.subr.bf16.mxu0 %v1317_v1 }
  0x31   : > { %1219 = vmatprep.subr.bf16.mxu1 %v1317_v1 }
  0x33   : > { %1208 = vmatpush3.bf16.msra.mxu0 %v1295_v38 }
  0x34   : > { %1220 = vmatpush3.bf16.msra.mxu1 %v1296_v36  ;;  %1225 = vmatprep.subr.bf16.mxu0 %v1317_v1 }
  0x35   : > { %1237 = vmatprep.subr.bf16.mxu1 %v1317_v1 }
  0x36   : > { %1210 = vmatmul.mubr.msk.bf16.vlgmr.msra.gmra.mrb[8].mxu0 %vm221_vm1, %v516_v40 }
  0x37   : > { %1222 = vmatmul.mubr.msk.bf16.vlgmr.msra.gmra.mrb[8].mxu1 %vm221_vm1, %v604_v39  ;;  %1226 = vmatpush3.bf16.msra.mxu0 %v1297_v42 }
  0x38   : > { %1238 = vmatpush3.bf16.msra.mxu1 %v1298_v41  ;;  %1227 = vmatprep.subr.bf16.mxu0 %v1317_v1  ;;  %v934_v41 = vld [vmem:[%s166_s20] sm:$0x1] }
  0x39   : > { %1239 = vmatprep.subr.bf16.mxu1 %v1317_v1  ;;  %1233 = vmatprep.mubr.msk.bf16.mxu0 %vm1318_vm0, %v1317_v1 }
  0x3a   : > { %1245 = vmatprep.mubr.msk.bf16.mxu1 %vm1318_vm0, %v1317_v1 }
  0x3b   : > { %1228 = vmatpush3.bf16.msra.mxu0 %v1299_v44 }
  0x3c   : > { %1240 = vmatpush3.bf16.msra.mxu1 %v1300_v43  ;;  %1229 = vmatprep.subr.bf16.mxu0 %v1317_v1 }
  0x3d   : > { %1241 = vmatprep.subr.bf16.mxu1 %v1317_v1 }
  0x3f   : > { %1230 = vmatpush3.bf16.msra.mxu0 %v1301_v47 }
  0x40   : > { %1242 = vmatpush3.bf16.msra.mxu1 %v1302_v45  ;;  %1231 = vmatprep.subr.bf16.mxu0 %v1317_v1 }
  0x41   : > { %1243 = vmatprep.subr.bf16.mxu1 %v1317_v1 }
  0x43   : > { %1232 = vmatpush3.bf16.msra.mxu0 %v1303_v50 }
  0x44   : > { %1244 = vmatpush3.bf16.msra.mxu1 %v1304_v49  ;;  %1249 = vmatprep.subr.bf16.mxu0 %v1317_v1 }
  0x46   : > { %1234 = vmatmul.mubr.msk.bf16.vlgmr.msra.gmra.mrb[12].mxu0 %vm221_vm1, %v1064_v46 }
  0x47   : > { %1246 = vmatmul.mubr.msk.bf16.vlgmr.msra.gmra.mrb[12].mxu1 %vm221_vm1, %v770_v51  ;;  %1250 = vmatpush3.bf16.msra.mxu0 %v1305_v52 }
  0x48   : > { %1257 = vmatprep.mubr.msk.bf16.mxu0 %vm1318_vm0, %v1317_v1  ;;  %1251 = vmatprep.subr.bf16.mxu0 %v1317_v1 }
  0x4b   : > { %1252 = vmatpush3.bf16.msra.mxu0 %v1306_v53 }
  0x4c   : > { %1253 = vmatprep.subr.bf16.mxu0 %v1317_v1 }
  0x4f   : > { %1254 = vmatpush3.bf16.msra.mxu0 %v1307_v54 }
  0x50   : > { %1255 = vmatprep.subr.bf16.mxu0 %v1317_v1 }
  0x53   : > { %1256 = vmatpush3.bf16.msra.mxu0 %v1308_v55 }
  0x56   : > { %1258 = vmatmul.mubr.msk.bf16.vlgmr.msra.gmra.mrb[16].mxu0 %vm221_vm1, %v858_v57 }
  0xe9   : > { %v259_v59 = vpop.f32.mrb[0].mxu0 }
  0xea   : > { %v326_v58 = vpop.f32.mrb[0].mxu1  ;;  %v1163_v61 = vpop.f32.mrb[1].mxu0 }
  0xeb   : > { %v1175_v60 = vpop.f32.mrb[1].mxu1  ;;  %v327_v62 = vadd.f32 %v326_v58, %v259_v59  ;;  %v262_v0 = vpop.f32.mrb[2].mxu0 }
  0xec   : > { %v329_v63 = vpop.f32.mrb[2].mxu1  ;;  %v1164_v3 = vpop.f32.mrb[3].mxu0 }
  0xed   : > { %v1176_v2 = vpop.f32.mrb[3].mxu1 }
  0xf9   : > { %v412_v5 = vpop.f32.mrb[4].mxu0 }
  0xfa   : > { %v491_v4 = vpop.f32.mrb[4].mxu1  ;;  %v418_v7 = vadd.f32 %v412_v5, %v327_v62  ;;  %v1187_v8 = vpop.f32.mrb[5].mxu0 }
  0xfb   : > { %v1199_v6 = vpop.f32.mrb[5].mxu1  ;;  %v415_v1 = vpop.f32.mrb[6].mxu0 }
  0xfc   : > { %v494_v9 = vpop.f32.mrb[6].mxu1  ;;  %v497_v11 = vadd.f32 %v491_v4, %v418_v7  ;;  %v1188_v12 = vpop.f32.mrb[7].mxu0 }
  0xfd   : > { %v1200_v10 = vpop.f32.mrb[7].mxu1 }
 0x109   : > { %v579_v14 = vpop.f32.mrb[8].mxu0 }
 0x10a   : > { %v666_v13 = vpop.f32.mrb[8].mxu1  ;;  %v585_v16 = vadd.f32 %v579_v14, %v497_v11  ;;  %v1211_v17 = vpop.f32.mrb[9].mxu0 }
 0x10b   : > { %v1223_v15 = vpop.f32.mrb[9].mxu1  ;;  %v582_v19 = vpop.f32.mrb[10].mxu0 }
 0x10c   : > { %v669_v18 = vpop.f32.mrb[10].mxu1  ;;  %v672_v21 = vadd.f32 %v666_v13, %v585_v16  ;;  %v1212_v22 = vpop.f32.mrb[11].mxu0 }
 0x10d   : > { %v1224_v20 = vpop.f32.mrb[11].mxu1 }
 0x119   : > { %v745_v24 = vpop.f32.mrb[12].mxu0 }
 0x11a   : > { %v833_v23 = vpop.f32.mrb[12].mxu1  ;;  %v751_v26 = vadd.f32 %v745_v24, %v672_v21  ;;  %v1235_v27 = vpop.f32.mrb[13].mxu0 }
 0x11b   : > { %v1247_v25 = vpop.f32.mrb[13].mxu1  ;;  %v748_v29 = vpop.f32.mrb[14].mxu0 }
 0x11c   : > { %v836_v28 = vpop.f32.mrb[14].mxu1  ;;  %v839_v31 = vadd.f32 %v833_v23, %v751_v26  ;;  %v1236_v32 = vpop.f32.mrb[15].mxu0 }
 0x11d   : > { %v1248_v30 = vpop.f32.mrb[15].mxu1 }
 0x129   : > { %v920_v33 = vpop.f32.mrb[16].mxu0 }
 0x12a   : > { %v926_v35 = vadd.f32 %v920_v33, %v839_v31  ;;  %v1259_v36 = vpop.f32.mrb[17].mxu0 }
 0x12b   : > { %v923_v37 = vpop.f32.mrb[18].mxu0 }
 0x12c   : > { %v928_v38 = vadd.f32 %v927_v34, %v926_v35  ;;  %v1260_v39 = vpop.f32.mrb[19].mxu0 }
 0x12e   : > { %v929_v40 = vmax.f32 %v928_v38, 0.0 }
 0x130   : > { %v930_v42 = vpack.c.bf16 %v929_v40, %v929_v40 }
 0x132   : > { %v935_v43 = vsel %vm933_vm4, %v930_v42, %v934_v41 }
 0x133   : > { %936 = vst [vmem:[%s166_s20] sm:$0x1] %v935_v43 }
 0x134 PF: > { %s13_s12 = sadd.s32 1, %s1315_s12  }
 0x135   : > { %p10_p4 = scmp.ge.s32.totalorder %s13_s12, 4  }
 0x137   :  { %12 = sbr.rel (!%p10_p4) target bundleno = 1 (0x1), region = 72 }

// kernel: nature_cnn_forward.7
= control target key start
LH: loop header
LB: loop body
LE: loop exit
PB: predicated region body
PF: predicated region fallthrough
CT: control target
= control target key end

     0   :  { %v170_v1 = vmov 0.0   ;;  %vm171_vm0 = vmmov 0   ;;  %s223_s0 = inlined_call_operand.vmem [shape: bf16[2,64], index: 0, kind: input, shape index: {}]   ;;  %s224_s1 = inlined_call_operand.vmem [shape: bf16[64,128], index: 1, kind: input, shape index: {}]   ;;  %s225_s2 = inlined_call_operand.vmem [shape: f32[1,128], index: 2, kind: input, shape index: {}]   ;;  %s226_s3 = inlined_call_operand.hbm [shape: f32[2,128], index: 3, kind: output, shape index: {}]  }
   0x1   :  { %v142_v0 = vld [vmem:[%s224_s1] sm:$0xff]   ;;  %127 = vmatprep.subr.bf16.mxu0 %v170_v1  ;;  %v143_v2 = vld [vmem:[%s224_s1 + $0x8] sm:$0xff]   ;;  %135 = vmatprep.mubr.msk.bf16.mxu0 %vm171_vm0, %v170_v1 }
   0x2   :  { %128 = vmatpush3.bf16.msra.mxu0 %v142_v0 }
   0x3   :  { %129 = vmatprep.subr.bf16.mxu0 %v170_v1 }
   0x4   :  { %8 = vsyncpa [#allocation3], 0  ;;  %v144_v3 = vld [vmem:[%s224_s1 + $0x10] sm:$0xff]   ;;  %v145_v4 = vld [vmem:[%s224_s1 + $0x18] sm:$0xff]   ;;  %vm56_vm1 = vcmask 523264   ;;  %s172_s24 = smov [#allocation2]  }
   0x5   :  { %v16_v5 = vld [vmem:[%s223_s0] sm:$0x1]  ;;  %s108_s25 = sshll.u32 %s172_s24, 4  ;;  %s109_s25 = int_to_ptr.vmem [resolvable:$true] %s108_s25 }
   0x6   :  { %130 = vmatpush3.bf16.msra.mxu0 %v143_v2  ;;  %v116_v6 = vld [vmem:[%s225_s2] ss:$0 sm:$0xff]  ;;  %s146_s1 = scalar_lea.vmem %s109_s25, 32  ;;  %p151_p1 = scmp.lt.s32.totalorder %s109_s25, %s109_s25 }
   0x7   :  { %131 = vmatprep.subr.bf16.mxu0 %v170_v1  ;;  %p147_p0 = scmp.ne.s32.totalorder %s109_s25, %s146_s1  ;;  %p152_p2 = scmp.lt.s32.totalorder %s146_s1, %s146_s1 }
   0x9   :  { %p153_p3 = por %p152_p2, %p151_p1 }
   0xa   :  { %132 = vmatpush3.bf16.msra.mxu0 %v144_v3 }
   0xb   :  { %133 = vmatprep.subr.bf16.mxu0 %v170_v1  ;;  %p154_p4 = pnand %p153_p3, %p147_p0 }
   0xe   :  { %134 = vmatpush3.bf16.msra.mxu0 %v145_v4 }
  0x11   :  { %136 = vmatmul.mubr.msk.bf16.vlgmr.msra.gmra.mrb[0].mxu0 %vm56_vm1, %v16_v5 }
  0xe4   :  { %v94_v7 = vpop.f32.mrb[0].mxu0 }
  0xe5   :  { %v95_v8 = vadd.f32 %v116_v6, %v94_v7  ;;  %v137_v9 = vpop.f32.mrb[1].mxu0 }
  0xe6   :  { %v97_v10 = vpop.f32.mrb[2].mxu0 }
  0xe7   :  { %v100_v11 = vmax.f32 %v95_v8, 0.0  ;;  %v138_v12 = vpop.f32.mrb[3].mxu0 }
  0xe9   :  { %101 = vst [vmem:[#allocation2] sm:$0x3] %v100_v11 }
  0xea   :  { %157 = shalt.err (!%p154_p4)
}
  0xeb   :  { %s158_s2 = scalar_lea.hbm %s226_s3, 32 }
  0xec   :  { %p159_p5 = scmp.ne.s32.totalorder %s226_s3, %s158_s2  ;;  %p162_p6 = scmp.lt.u32.totalorder %s158_s2, %s226_s3 }
  0xee   :  { %p164_p7 = pnand %p162_p6, %p159_p5 }
  0xf0   :  { %167 = shalt.err (!%p164_p7)
}
  0xf1   :  { %111 = dma.vmem_to_hbm [thread:$0]  %s109_s25, 32, %s226_s3, [#allocation3]  }
  0xf2   :  { %168 = dma.done.wait [#allocation3], 32  }
  0xf3   :  { %169 = vsyncadd [#allocation3], 4294967264 }
  0xf4   :  { %115 = vsyncpa [#allocation3], 1 }

</bundles_post_ra>
